<compile_context>
chip_gen: v5e
topology: v5e:2x2
jax: 0.10.0
libtpu: 0.0.40
codegen_flags: <defaults>
</compile_context>

<pallas_src>
import jax
import jax.numpy as jnp
from jax.experimental import pallas as pl
from jax.experimental.pallas import tpu as pltpu

INPUT_DIM = 4
HIDDEN_DIM = 64
OUTPUT_DIM = 64
PADDED_DIM = 128              # lane-dense padded channel width
LN_EPS = 1e-5

FUSED_MAX_NODES = 1024        # Np <= this -> single fused call, A fully VMEM-resident
ACT_RESIDENT_MAX_BYTES = 8 * 1024 * 1024   # keep activations VMEM-resident up to 8 MiB


# ----------------------------------------------------------------------------
# helpers
# ----------------------------------------------------------------------------
def _round_up(x, m):
    return ((x + m - 1) // m) * m


def padded_num_nodes(n):
    return _round_up(max(n, 8), 128)


def _largest_divisor_leq(m, cap):
    cap = max(1, min(cap, m))
    for d in range(cap, 0, -1):
        if m % d == 0:
            return d
    return 1


def _choose_tiles(np_):
    """Pick (TM, TK) as 128-multiple exact divisors of Np (no padding blowup).

    TM <= 1024 with >= 2 row blocks when possible (megacore).  TK as large as
    possible (<= 4096) subject to the double-buffered A tile staying small.
    """
    m = np_ // 128
    tm_cap = 8 if m >= 16 else max(m // 2, 1)
    tm = 128 * _largest_divisor_leq(m, tm_cap)
    # keep 2 x (tm*tk) bf16 A buffers <= ~8 MiB  ->  tm*tk <= 2M elements
    tk_cap = max(1, min(32, (2 * 1024 * 1024) // (tm * 128)))
    tk = 128 * _largest_divisor_leq(m, tk_cap)
    return tm, tk


def _vmem_budget_tiled(np_, tm, tk, hp, act_resident):
    a_bytes = 2 * tm * tk * 2                                   # bf16 A tiles, 2 bufs
    act_bytes = (np_ if act_resident else 2 * tk) * hp * 2      # bf16 activations
    out_bytes = 2 * tm * hp * 4
    acc_bytes = tm * hp * 4
    p_bytes = 2 * (8 * hp * 4 + 3 * hp * hp * 2)
    total = a_bytes + 2 * act_bytes + out_bytes + acc_bytes + p_bytes
    return int(min(max(total * 5 // 4, 8 * 1024 * 1024), 48 * 1024 * 1024))


def _vmem_budget_fused(np_, hp):
    a_bytes = 2 * np_ * np_ * 2
    act_bytes = 2 * np_ * hp * 2
    out_bytes = 2 * np_ * hp * 4
    interm = 8 * np_ * hp * 4                                   # in-kernel f32 temps
    p_bytes = 2 * (8 * hp * 4 + 3 * hp * hp * 2)
    total = a_bytes + act_bytes + out_bytes + interm + p_bytes
    return int(min(max(total * 5 // 4, 16 * 1024 * 1024), 48 * 1024 * 1024))


def _layer_norm_padded(h, gamma, beta):
    """LayerNorm over the true HIDDEN_DIM lanes of a zero-padded [*, PADDED_DIM] block.

    INVARIANT: padded lanes of h, gamma, beta (and of all weights feeding h) are
    exactly zero, so full-lane sums equal true-lane sums; divide by the true dim.
    """
    s = jnp.sum(h, axis=-1, keepdims=True)
    mean = s / HIDDEN_DIM
    ssq = jnp.sum(h * h, axis=-1, keepdims=True)
    var = jnp.maximum(ssq / HIDDEN_DIM - mean * mean, 0.0)
    return (h - mean) * jax.lax.rsqrt(var + LN_EPS) * gamma + beta


def _pad_row(v, cols):
    v = jnp.asarray(v, jnp.float32).reshape(1, -1)
    return jnp.zeros((1, cols), jnp.float32).at[:, : v.shape[1]].set(v)


def _pad_mat(w, rows, cols):
    w = jnp.asarray(w, jnp.float32)
    return jnp.zeros((rows, cols), jnp.float32).at[: w.shape[0], : w.shape[1]].set(w)


# ----------------------------------------------------------------------------
# fused kernel (small graphs: whole bf16 A_hat resident in VMEM, A read once)
# ----------------------------------------------------------------------------
def fused_gcn_kernel(a_ref, xw1_ref, b1_ref, g1_ref, be1_ref, w2_ref,
                     b2_ref, g2_ref, be2_ref, fw1_ref, fb1_ref, fw2_ref, fb2_ref,
                     out_ref):
    # conv1 aggregation + bias + norm1 + relu (dropout = identity)
    h = jnp.dot(a_ref[...], xw1_ref[...], preferred_element_type=jnp.float32)
    h = h + b1_ref[...]
    h = _layer_norm_padded(h, g1_ref[...], be1_ref[...])
    h = jnp.maximum(h, 0.0)
    hw2 = jnp.dot(h.astype(jnp.bfloat16), w2_ref[...],
                  preferred_element_type=jnp.float32).astype(jnp.bfloat16)
    # conv2 aggregation + bias + norm2 + relu
    h2 = jnp.dot(a_ref[...], hw2, preferred_element_type=jnp.float32)
    h2 = h2 + b2_ref[...]
    h2 = _layer_norm_padded(h2, g2_ref[...], be2_ref[...])
    h2 = jnp.maximum(h2, 0.0)
    # fc1 + relu (dropout = identity) + fc2
    f = jnp.dot(h2.astype(jnp.bfloat16), fw1_ref[...],
                preferred_element_type=jnp.float32) + fb1_ref[...]
    f = jnp.maximum(f, 0.0)
    o = jnp.dot(f.astype(jnp.bfloat16), fw2_ref[...],
                preferred_element_type=jnp.float32) + fb2_ref[...]
    out_ref[...] = o.astype(out_ref.dtype)


def _forward_fused(a_pad, xw1, pp, np_):
    hp = PADDED_DIM

    def full(shape):
        return pl.BlockSpec(shape, lambda i: (0, 0))

    cost = pl.CostEstimate(
        flops=4 * np_ * np_ * hp + 6 * np_ * hp * hp,
        transcendentals=2 * np_,
        bytes_accessed=np_ * np_ * 2 + np_ * hp * 2 + np_ * hp * 4 + 3 * hp * hp * 2,
    )

    return pl.pallas_call(
        fused_gcn_kernel,
        out_shape=jax.ShapeDtypeStruct((np_, hp), jnp.float32),
        grid_spec=pltpu.PrefetchScalarGridSpec(
            num_scalar_prefetch=0, grid=(1,),
            in_specs=[full((np_, np_)), full((np_, hp)),
                      full((1, hp)), full((1, hp)), full((1, hp)), full((hp, hp)),
                      full((1, hp)), full((1, hp)), full((1, hp)),
                      full((hp, hp)), full((1, hp)), full((hp, hp)), full((1, hp))],
            out_specs=full((np_, hp))),
        compiler_params=pltpu.CompilerParams(
            dimension_semantics=("arbitrary",),
            vmem_limit_bytes=_vmem_budget_fused(np_, hp)),
        cost_estimate=cost,
    )(a_pad, xw1, pp["b1"], pp["g1"], pp["be1"], pp["w2"],
      pp["b2"], pp["g2"], pp["be2"], pp["fw1"], pp["fb1"], pp["fw2"], pp["fb2"])


# ----------------------------------------------------------------------------
# tiled two-pass kernels (larger graphs)
# ----------------------------------------------------------------------------
def _make_pass1_kernel(act_resident, tk):
    def kernel(a_ref, xw1_ref, b1_ref, g1_ref, be1_ref, w2_ref, out_ref, acc_ref):
        """acc += A[i,k] @ (x@W1)[k]; epilogue: +b1, LN1, ReLU, @W2 -> h1w2 (bf16)."""
        k = pl.program_id(1)

        @pl.when(k == 0)
        def _():
            acc_ref[...] = jnp.zeros_like(acc_ref)

        if act_resident:
            start = pl.multiple_of(k * tk, tk)
            act = xw1_ref[pl.ds(start, tk), :]
        else:
            act = xw1_ref[...]
        acc_ref[...] += jnp.dot(a_ref[...], act, preferred_element_type=jnp.float32)

        @pl.when(k == pl.num_programs(1) - 1)
        def _():
            h = acc_ref[...] + b1_ref[...]                        # GCN bias
            h = _layer_norm_padded(h, g1_ref[...], be1_ref[...])  # norm1 (f32)
            h = jnp.maximum(h, 0.0)                               # relu (dropout = id)
            out_ref[...] = jnp.dot(h.astype(jnp.bfloat16), w2_ref[...],
                                   preferred_element_type=jnp.float32
                                   ).astype(out_ref.dtype)        # hoist h1 @ W2
    return kernel


def _make_pass2_kernel(act_resident, tk):
    def kernel(a_ref, hw2_ref, b2_ref, g2_ref, be2_ref,
               fw1_ref, fb1_ref, fw2_ref, fb2_ref, out_ref, acc_ref):
        """acc += A[i,k] @ (h1@W2)[k]; epilogue: +b2, LN2, ReLU, fc1+ReLU, fc2."""
        k = pl.program_id(1)

        @pl.when(k == 0)
        def _():
            acc_ref[...] = jnp.zeros_like(acc_ref)

        if act_resident:
            start = pl.multiple_of(k * tk, tk)
            act = hw2_ref[pl.ds(start, tk), :]
        else:
            act = hw2_ref[...]
        acc_ref[...] += jnp.dot(a_ref[...], act, preferred_element_type=jnp.float32)

        @pl.when(k == pl.num_programs(1) - 1)
        def _():
            h = acc_ref[...] + b2_ref[...]
            h = _layer_norm_padded(h, g2_ref[...], be2_ref[...])
            h = jnp.maximum(h, 0.0)
            f = jnp.dot(h.astype(jnp.bfloat16), fw1_ref[...],
                        preferred_element_type=jnp.float32) + fb1_ref[...]
            f = jnp.maximum(f, 0.0)                               # fc1 + relu
            o = jnp.dot(f.astype(jnp.bfloat16), fw2_ref[...],
                        preferred_element_type=jnp.float32) + fb2_ref[...]
            out_ref[...] = o.astype(out_ref.dtype)                # fc2
    return kernel


def _forward_tiled(a_pad, xw1, pp, np_, tm, tk):
    hp = PADDED_DIM
    act_resident = np_ * hp * 2 <= ACT_RESIDENT_MAX_BYTES
    grid = (np_ // tm, np_ // tk)

    a_spec = pl.BlockSpec((tm, tk), lambda i, k: (i, k))
    if act_resident:
        # full-array, constant index map -> fetched once, stays in VMEM
        act_spec = pl.BlockSpec((np_, hp), lambda i, k: (0, 0))
    else:
        act_spec = pl.BlockSpec((tk, hp), lambda i, k: (k, 0))
    row_spec = pl.BlockSpec((1, hp), lambda i, k: (0, 0))         # resident params
    mat_spec = pl.BlockSpec((hp, hp), lambda i, k: (0, 0))        # resident weights
    out_spec = pl.BlockSpec((tm, hp), lambda i, k: (i, 0))

    cparams = pltpu.CompilerParams(
        dimension_semantics=("parallel", "arbitrary"),
        vmem_limit_bytes=_vmem_budget_tiled(np_, tm, tk, hp, act_resident),
    )

    act_rereads = 0 if act_resident else (np_ // tm - 1) * np_ * hp * 2
    cost1 = pl.CostEstimate(
        flops=2 * np_ * np_ * hp + 2 * np_ * hp * hp,
        transcendentals=np_,
        bytes_accessed=np_ * np_ * 2 + 2 * np_ * hp * 2 + hp * hp * 2 + act_rereads,
    )
    cost2 = pl.CostEstimate(
        flops=2 * np_ * np_ * hp + 4 * np_ * hp * hp,
        transcendentals=np_,
        bytes_accessed=(np_ * np_ * 2 + np_ * hp * 2 + np_ * hp * 4
                        + 3 * hp * hp * 2 + act_rereads),
    )

    # ---- pass 1: aggregate conv1, fuse norm1/relu/(@W2) into epilogue ----
    h1w2 = pl.pallas_call(
        _make_pass1_kernel(act_resident, tk),
        out_shape=jax.ShapeDtypeStruct((np_, hp), jnp.bfloat16),
        grid_spec=pltpu.PrefetchScalarGridSpec(
            num_scalar_prefetch=0, grid=grid,
            in_specs=[a_spec, act_spec, row_spec, row_spec, row_spec, mat_spec],
            out_specs=out_spec,
            scratch_shapes=[pltpu.VMEM((tm, hp), jnp.float32)]),
        compiler_params=cparams,
        cost_estimate=cost1,
    )(a_pad, xw1, pp["b1"], pp["g1"], pp["be1"], pp["w2"])

    # ---- pass 2: aggregate conv2, fuse norm2/relu/fc1/relu/fc2 into epilogue ----
    out = pl.pallas_call(
        _make_pass2_kernel(act_resident, tk),
        out_shape=jax.ShapeDtypeStruct((np_, hp), jnp.float32),
        grid_spec=pltpu.PrefetchScalarGridSpec(
            num_scalar_prefetch=0, grid=grid,
            in_specs=[a_spec, act_spec, row_spec, row_spec, row_spec,
                      mat_spec, row_spec, mat_spec, row_spec],
            out_specs=out_spec,
            scratch_shapes=[pltpu.VMEM((tm, hp), jnp.float32)]),
        compiler_params=cparams,
        cost_estimate=cost2,
    )(a_pad, h1w2, pp["b2"], pp["g2"], pp["be2"],
      pp["fw1"], pp["fb1"], pp["fw2"], pp["fb2"])

    return out


# ----------------------------------------------------------------------------
# forward wrapper
# ----------------------------------------------------------------------------
def optimized_gcn_forward(a_pad, x, params, *, force_tiled=False, tile_override=None):
    """Forward pass.

    a_pad: [Np, Np] bf16 padded normalized adjacency (from
           build_normalized_adjacency) — built ONCE per static graph and reused.
    x:     [n, INPUT_DIM] node features.
    """
    n = x.shape[0]
    np_ = a_pad.shape[0]
    assert a_pad.shape == (np_, np_) and np_ % 128 == 0 and np_ >= n
    hp = PADDED_DIM

    # Hoisted feature transform x @ W1 (K=4; once, outside the A-tiled aggregation).
    w1p = _pad_mat(params["w1"], INPUT_DIM, hp)
    xw1 = jnp.dot(jnp.asarray(x, jnp.float32), w1p, preferred_element_type=jnp.float32)
    xw1 = jnp.zeros((np_, hp), jnp.float32).at[:n].set(xw1).astype(jnp.bfloat16)

    pp = {
        "b1": _pad_row(params["b1"], hp),
        "g1": _pad_row(params["g1"], hp),
        "be1": _pad_row(params["be1"], hp),
        "b2": _pad_row(params["b2"], hp),
        "g2": _pad_row(params["g2"], hp),
        "be2": _pad_row(params["be2"], hp),
        "w2": _pad_mat(params["w2"], hp, hp).astype(jnp.bfloat16),
        "fw1": _pad_mat(params["fw1"], hp, hp).astype(jnp.bfloat16),
        "fb1": _pad_row(params["fb1"], hp),
        "fw2": _pad_mat(params["fw2"], hp, hp).astype(jnp.bfloat16),
        "fb2": _pad_row(params["fb2"], hp),
    }

    if (not force_tiled) and np_ <= FUSED_MAX_NODES:
        out = _forward_fused(a_pad, xw1, pp, np_)
    else:
        if tile_override is not None:
            tm, tk = tile_override
        else:
            tm, tk = _choose_tiles(np_)
        assert np_ % tm == 0 and np_ % tk == 0 and tm % 8 == 0 and tk % 128 == 0
        out = _forward_tiled(a_pad, xw1, pp, np_, tm, tk)

    return out[:n, :OUTPUT_DIM]


# ----------------------------------------------------------------------------
# graph preprocessing (plain JAX glue; run ONCE per static graph)
# ----------------------------------------------------------------------------
def build_normalized_adjacency(edge_index, num_nodes):
    """Dense, padded, bf16 A_hat = D^{-1/2}(A + I)D^{-1/2} from [2, E] edge_index.

    Returns a [Np, Np] bf16 array (Np = round_up(n, 128)); padded rows/cols are
    zero.  Self-loop weight is SET to exactly 1.0.  The graph is static at
    inference, so callers should hoist/cache this result across forward calls.
    """
    np_ = padded_num_nodes(num_nodes)
    src, dst = edge_index
    a = jnp.zeros((np_, np_), jnp.float32)
    a = a.at[dst, src].set(1.0)
    a = a.at[src, dst].set(1.0)                       # undirected
    idx = jnp.arange(num_nodes)
    a = a.at[idx, idx].set(1.0)                       # self loops, weight exactly 1
    deg = jnp.sum(a, axis=1)
    dinv = jax.lax.rsqrt(jnp.maximum(deg, 1e-12))
    return (a * dinv[:, None] * dinv[None, :]).astype(jnp.bfloat16)


def init_params(key):
    ks = jax.random.split(key, 8)

    def glorot(k, shape):
        fan_in, fan_out = shape
        lim = (6.0 / (fan_in + fan_out)) ** 0.5
        return jax.random.uniform(k, shape, jnp.float32, -lim, lim)

    return {
        "w1": glorot(ks[0], (INPUT_DIM, HIDDEN_DIM)),
        "b1": jnp.zeros((1, HIDDEN_DIM), jnp.float32),
        "g1": jnp.ones((1, HIDDEN_DIM), jnp.float32),
        "be1": jnp.zeros((1, HIDDEN_DIM), jnp.float32),
        "w2": glorot(ks[1], (HIDDEN_DIM, HIDDEN_DIM)),
        "b2": jnp.zeros((1, HIDDEN_DIM), jnp.float32),
        "g2": jnp.ones((1, HIDDEN_DIM), jnp.float32),
        "be2": jnp.zeros((1, HIDDEN_DIM), jnp.float32),
        "fw1": glorot(ks[2], (HIDDEN_DIM, HIDDEN_DIM)),
        "fb1": 0.01 * jax.random.normal(ks[3], (1, HIDDEN_DIM), jnp.float32),
        "fw2": glorot(ks[4], (HIDDEN_DIM, OUTPUT_DIM)),
        "fb2": 0.01 * jax.random.normal(ks[5], (1, OUTPUT_DIM), jnp.float32),
    }


# ----------------------------------------------------------------------------
# pure-JAX f32 reference (same adjacency matrix as the kernel)
# ----------------------------------------------------------------------------
def _ln_ref(h, g, b):
    mu = jnp.mean(h, axis=-1, keepdims=True)
    var = jnp.mean((h - mu) ** 2, axis=-1, keepdims=True)
    return (h - mu) * jax.lax.rsqrt(var + LN_EPS) * g + b


def reference_forward(a_hat_f32, x, p):
    h = a_hat_f32 @ (x @ p["w1"]) + p["b1"]
    h = jnp.maximum(_ln_ref(h, p["g1"], p["be1"]), 0.0)
    h = a_hat_f32 @ (h @ p["w2"]) + p["b2"]
    h = jnp.maximum(_ln_ref(h, p["g2"], p["be2"]), 0.0)
    h = jnp.maximum(h @ p["fw1"] + p["fb1"], 0.0)
    return h @ p["fw2"] + p["fb2"]


if __name__ == "__main__":
    key = jax.random.PRNGKey(0)
    k_x, k_e, k_p, k_x2, k_e2 = jax.random.split(key, 5)
    params = init_params(k_p)

    # ---- test 1: small graph -> fused single-call path (A fully VMEM-resident) ----
    n1, e1 = 16, 32
    x1 = jax.random.normal(k_x, (n1, INPUT_DIM), jnp.float32)
    ei1 = jax.random.randint(k_e, (2, e1), 0, n1, jnp.int32)
    a1 = build_normalized_adjacency(ei1, n1)

    out1 = optimized_gcn_forward(a1, x1, params)
    out1 = jax.block_until_ready(out1)
    assert out1.shape == (n1, OUTPUT_DIM)
    assert jnp.all(jnp.isfinite(out1))
    ref1 = reference_forward(a1[:n1, :n1].astype(jnp.float32), x1, params)
    assert float(jnp.max(jnp.abs(out1 - ref1))) < 0.25   # bf16 streams vs f32 ref

    # ---- test 2: tiled two-pass path (resident activations, k-accumulation) ----
    n2, e2 = 500, 2000
    x2 = jax.random.normal(k_x2, (n2, INPUT_DIM), jnp.float32)
    ei2 = jax.random.randint(k_e2, (2, e2), 0, n2, jnp.int32)
    a2 = build_normalized_adjacency(ei2, n2)          # Np = 512

    out2 = optimized_gcn_forward(a2, x2, params, force_tiled=True,
                                 tile_override=(128, 256))   # grid = (4, 2)
    out2 = jax.block_until_ready(out2)
    assert out2.shape == (n2, OUTPUT_DIM)
    assert jnp.all(jnp.isfinite(out2))
    ref2 = reference_forward(a2[:n2, :n2].astype(jnp.float32), x2, params)
    assert float(jnp.max(jnp.abs(out2 - ref2))) < 0.25

    print("KERNEL_OK")
</pallas_src>

<mosaic_0001>
module attributes {stable_mosaic.version = 11 : i64} {
  func.func @fused_gcn_kernel(%arg0: i32, %arg1: memref<128x128xbf16, #tpu.memory_space<vmem>>, %arg2: memref<128x128xbf16, #tpu.memory_space<vmem>>, %arg3: memref<1x128xf32, #tpu.memory_space<vmem>>, %arg4: memref<1x128xf32, #tpu.memory_space<vmem>>, %arg5: memref<1x128xf32, #tpu.memory_space<vmem>>, %arg6: memref<128x128xbf16, #tpu.memory_space<vmem>>, %arg7: memref<1x128xf32, #tpu.memory_space<vmem>>, %arg8: memref<1x128xf32, #tpu.memory_space<vmem>>, %arg9: memref<1x128xf32, #tpu.memory_space<vmem>>, %arg10: memref<128x128xbf16, #tpu.memory_space<vmem>>, %arg11: memref<1x128xf32, #tpu.memory_space<vmem>>, %arg12: memref<128x128xbf16, #tpu.memory_space<vmem>>, %arg13: memref<1x128xf32, #tpu.memory_space<vmem>>, %arg14: memref<128x128xf32, #tpu.memory_space<vmem>>) attributes {dimension_semantics = [#tpu.dimension_semantics<arbitrary>], iteration_bounds = array<i64: 1>, scalar_prefetch = 0 : i64, scratch_operands = 0 : i64, tpu.core_type = #tpu.core_type<tc>, window_params = [{pipeline_mode = #tpu.pipeline_mode<synchronous>, transform_indices = @transform_0, window_bounds = array<i64: 128, 128>}, {pipeline_mode = #tpu.pipeline_mode<synchronous>, transform_indices = @transform_1, window_bounds = array<i64: 128, 128>}, {pipeline_mode = #tpu.pipeline_mode<synchronous>, transform_indices = @transform_2, window_bounds = array<i64: 1, 128>}, {pipeline_mode = #tpu.pipeline_mode<synchronous>, transform_indices = @transform_3, window_bounds = array<i64: 1, 128>}, {pipeline_mode = #tpu.pipeline_mode<synchronous>, transform_indices = @transform_4, window_bounds = array<i64: 1, 128>}, {pipeline_mode = #tpu.pipeline_mode<synchronous>, transform_indices = @transform_5, window_bounds = array<i64: 128, 128>}, {pipeline_mode = #tpu.pipeline_mode<synchronous>, transform_indices = @transform_6, window_bounds = array<i64: 1, 128>}, {pipeline_mode = #tpu.pipeline_mode<synchronous>, transform_indices = @transform_7, window_bounds = array<i64: 1, 128>}, {pipeline_mode = #tpu.pipeline_mode<synchronous>, transform_indices = @transform_8, window_bounds = array<i64: 1, 128>}, {pipeline_mode = #tpu.pipeline_mode<synchronous>, transform_indices = @transform_9, window_bounds = array<i64: 128, 128>}, {pipeline_mode = #tpu.pipeline_mode<synchronous>, transform_indices = @transform_10, window_bounds = array<i64: 1, 128>}, {pipeline_mode = #tpu.pipeline_mode<synchronous>, transform_indices = @transform_11, window_bounds = array<i64: 128, 128>}, {pipeline_mode = #tpu.pipeline_mode<synchronous>, transform_indices = @transform_12, window_bounds = array<i64: 1, 128>}, {pipeline_mode = #tpu.pipeline_mode<synchronous>, transform_indices = @transform_13, window_bounds = array<i64: 128, 128>}]} {
    %c0 = arith.constant 0 : index
    %c0_0 = arith.constant 0 : index
    %0 = vector.load %arg1[%c0, %c0_0] : memref<128x128xbf16, #tpu.memory_space<vmem>>, vector<128x128xbf16>
    %c0_1 = arith.constant 0 : index
    %c0_2 = arith.constant 0 : index
    %1 = vector.load %arg2[%c0_1, %c0_2] : memref<128x128xbf16, #tpu.memory_space<vmem>>, vector<128x128xbf16>
    %cst = arith.constant dense<0.000000e+00> : vector<128x128xf32>
    %2 = tpu.matmul %0, %1, %cst {dimension_numbers = #tpu.dot_dimension_numbers<[1], [0], [0], [1], [0, 0, 1, 1], [], []>} : vector<128x128xbf16>, vector<128x128xbf16>, vector<128x128xf32> -> vector<128x128xf32>
    %c0_3 = arith.constant 0 : index
    %c0_4 = arith.constant 0 : index
    %3 = vector.load %arg3[%c0_3, %c0_4] : memref<1x128xf32, #tpu.memory_space<vmem>>, vector<1x128xf32>
    %4 = vector.broadcast %3 : vector<1x128xf32> to vector<128x128xf32>
    %5 = arith.addf %2, %4 : vector<128x128xf32>
    %c0_5 = arith.constant 0 : index
    %c0_6 = arith.constant 0 : index
    %6 = vector.load %arg4[%c0_5, %c0_6] : memref<1x128xf32, #tpu.memory_space<vmem>>, vector<1x128xf32>
    %c0_7 = arith.constant 0 : index
    %c0_8 = arith.constant 0 : index
    %7 = vector.load %arg5[%c0_7, %c0_8] : memref<1x128xf32, #tpu.memory_space<vmem>>, vector<1x128xf32>
    %cst_9 = arith.constant dense<0.000000e+00> : vector<128xf32>
    %8 = vector.multi_reduction <add>, %5, %cst_9 [1] : vector<128x128xf32> to vector<128xf32>
    %9 = vector.shape_cast %8 : vector<128xf32> to vector<128x1xf32>
    %cst_10 = arith.constant 6.400000e+01 : f32
    %10 = vector.broadcast %cst_10 : f32 to vector<128x1xf32>
    %11 = arith.divf %9, %10 : vector<128x1xf32>
    %12 = arith.mulf %5, %5 : vector<128x128xf32>
    %cst_11 = arith.constant dense<0.000000e+00> : vector<128xf32>
    %13 = vector.multi_reduction <add>, %12, %cst_11 [1] : vector<128x128xf32> to vector<128xf32>
    %14 = vector.shape_cast %13 : vector<128xf32> to vector<128x1xf32>
    %cst_12 = arith.constant 6.400000e+01 : f32
    %15 = vector.broadcast %cst_12 : f32 to vector<128x1xf32>
    %16 = arith.divf %14, %15 : vector<128x1xf32>
    %17 = arith.mulf %11, %11 : vector<128x1xf32>
    %18 = arith.subf %16, %17 : vector<128x1xf32>
    %cst_13 = arith.constant 0.000000e+00 : f32
    %19 = vector.broadcast %cst_13 : f32 to vector<128x1xf32>
    %20 = arith.maximumf %18, %19 : vector<128x1xf32>
    %21 = vector.broadcast %11 : vector<128x1xf32> to vector<128x128xf32>
    %22 = arith.subf %5, %21 : vector<128x128xf32>
    %cst_14 = arith.constant 9.99999974E-6 : f32
    %23 = vector.broadcast %cst_14 : f32 to vector<128x1xf32>
    %24 = arith.addf %20, %23 : vector<128x1xf32>
    %25 = math.rsqrt %24 : vector<128x1xf32>
    %26 = vector.broadcast %25 : vector<128x1xf32> to vector<128x128xf32>
    %27 = arith.mulf %22, %26 : vector<128x128xf32>
    %28 = vector.broadcast %6 : vector<1x128xf32> to vector<128x128xf32>
    %29 = arith.mulf %27, %28 : vector<128x128xf32>
    %30 = vector.broadcast %7 : vector<1x128xf32> to vector<128x128xf32>
    %31 = arith.addf %29, %30 : vector<128x128xf32>
    %cst_15 = arith.constant 0.000000e+00 : f32
    %32 = vector.broadcast %cst_15 : f32 to vector<128x128xf32>
    %33 = arith.maximumf %31, %32 : vector<128x128xf32>
    %34 = arith.truncf %33 : vector<128x128xf32> to vector<128x128xbf16>
    %c0_16 = arith.constant 0 : index
    %c0_17 = arith.constant 0 : index
    %35 = vector.load %arg6[%c0_16, %c0_17] : memref<128x128xbf16, #tpu.memory_space<vmem>>, vector<128x128xbf16>
    %cst_18 = arith.constant dense<0.000000e+00> : vector<128x128xf32>
    %36 = tpu.matmul %34, %35, %cst_18 {dimension_numbers = #tpu.dot_dimension_numbers<[1], [0], [0], [1], [0, 0, 1, 1], [], []>} : vector<128x128xbf16>, vector<128x128xbf16>, vector<128x128xf32> -> vector<128x128xf32>
    %37 = arith.truncf %36 : vector<128x128xf32> to vector<128x128xbf16>
    %c0_19 = arith.constant 0 : index
    %c0_20 = arith.constant 0 : index
    %38 = vector.load %arg1[%c0_19, %c0_20] : memref<128x128xbf16, #tpu.memory_space<vmem>>, vector<128x128xbf16>
    %cst_21 = arith.constant dense<0.000000e+00> : vector<128x128xf32>
    %39 = tpu.matmul %38, %37, %cst_21 {dimension_numbers = #tpu.dot_dimension_numbers<[1], [0], [0], [1], [0, 0, 1, 1], [], []>} : vector<128x128xbf16>, vector<128x128xbf16>, vector<128x128xf32> -> vector<128x128xf32>
    %c0_22 = arith.constant 0 : index
    %c0_23 = arith.constant 0 : index
    %40 = vector.load %arg7[%c0_22, %c0_23] : memref<1x128xf32, #tpu.memory_space<vmem>>, vector<1x128xf32>
    %41 = vector.broadcast %40 : vector<1x128xf32> to vector<128x128xf32>
    %42 = arith.addf %39, %41 : vector<128x128xf32>
    %c0_24 = arith.constant 0 : index
    %c0_25 = arith.constant 0 : index
    %43 = vector.load %arg8[%c0_24, %c0_25] : memref<1x128xf32, #tpu.memory_space<vmem>>, vector<1x128xf32>
    %c0_26 = arith.constant 0 : index
    %c0_27 = arith.constant 0 : index
    %44 = vector.load %arg9[%c0_26, %c0_27] : memref<1x128xf32, #tpu.memory_space<vmem>>, vector<1x128xf32>
    %cst_28 = arith.constant dense<0.000000e+00> : vector<128xf32>
    %45 = vector.multi_reduction <add>, %42, %cst_28 [1] : vector<128x128xf32> to vector<128xf32>
    %46 = vector.shape_cast %45 : vector<128xf32> to vector<128x1xf32>
    %cst_29 = arith.constant 6.400000e+01 : f32
    %47 = vector.broadcast %cst_29 : f32 to vector<128x1xf32>
    %48 = arith.divf %46, %47 : vector<128x1xf32>
    %49 = arith.mulf %42, %42 : vector<128x128xf32>
    %cst_30 = arith.constant dense<0.000000e+00> : vector<128xf32>
    %50 = vector.multi_reduction <add>, %49, %cst_30 [1] : vector<128x128xf32> to vector<128xf32>
    %51 = vector.shape_cast %50 : vector<128xf32> to vector<128x1xf32>
    %cst_31 = arith.constant 6.400000e+01 : f32
    %52 = vector.broadcast %cst_31 : f32 to vector<128x1xf32>
    %53 = arith.divf %51, %52 : vector<128x1xf32>
    %54 = arith.mulf %48, %48 : vector<128x1xf32>
    %55 = arith.subf %53, %54 : vector<128x1xf32>
    %cst_32 = arith.constant 0.000000e+00 : f32
    %56 = vector.broadcast %cst_32 : f32 to vector<128x1xf32>
    %57 = arith.maximumf %55, %56 : vector<128x1xf32>
    %58 = vector.broadcast %48 : vector<128x1xf32> to vector<128x128xf32>
    %59 = arith.subf %42, %58 : vector<128x128xf32>
    %cst_33 = arith.constant 9.99999974E-6 : f32
    %60 = vector.broadcast %cst_33 : f32 to vector<128x1xf32>
    %61 = arith.addf %57, %60 : vector<128x1xf32>
    %62 = math.rsqrt %61 : vector<128x1xf32>
    %63 = vector.broadcast %62 : vector<128x1xf32> to vector<128x128xf32>
    %64 = arith.mulf %59, %63 : vector<128x128xf32>
    %65 = vector.broadcast %43 : vector<1x128xf32> to vector<128x128xf32>
    %66 = arith.mulf %64, %65 : vector<128x128xf32>
    %67 = vector.broadcast %44 : vector<1x128xf32> to vector<128x128xf32>
    %68 = arith.addf %66, %67 : vector<128x128xf32>
    %cst_34 = arith.constant 0.000000e+00 : f32
    %69 = vector.broadcast %cst_34 : f32 to vector<128x128xf32>
    %70 = arith.maximumf %68, %69 : vector<128x128xf32>
    %71 = arith.truncf %70 : vector<128x128xf32> to vector<128x128xbf16>
    %c0_35 = arith.constant 0 : index
    %c0_36 = arith.constant 0 : index
    %72 = vector.load %arg10[%c0_35, %c0_36] : memref<128x128xbf16, #tpu.memory_space<vmem>>, vector<128x128xbf16>
    %cst_37 = arith.constant dense<0.000000e+00> : vector<128x128xf32>
    %73 = tpu.matmul %71, %72, %cst_37 {dimension_numbers = #tpu.dot_dimension_numbers<[1], [0], [0], [1], [0, 0, 1, 1], [], []>} : vector<128x128xbf16>, vector<128x128xbf16>, vector<128x128xf32> -> vector<128x128xf32>
    %c0_38 = arith.constant 0 : index
    %c0_39 = arith.constant 0 : index
    %74 = vector.load %arg11[%c0_38, %c0_39] : memref<1x128xf32, #tpu.memory_space<vmem>>, vector<1x128xf32>
    %75 = vector.broadcast %74 : vector<1x128xf32> to vector<128x128xf32>
    %76 = arith.addf %73, %75 : vector<128x128xf32>
    %cst_40 = arith.constant 0.000000e+00 : f32
    %77 = vector.broadcast %cst_40 : f32 to vector<128x128xf32>
    %78 = arith.maximumf %76, %77 : vector<128x128xf32>
    %79 = arith.truncf %78 : vector<128x128xf32> to vector<128x128xbf16>
    %c0_41 = arith.constant 0 : index
    %c0_42 = arith.constant 0 : index
    %80 = vector.load %arg12[%c0_41, %c0_42] : memref<128x128xbf16, #tpu.memory_space<vmem>>, vector<128x128xbf16>
    %cst_43 = arith.constant dense<0.000000e+00> : vector<128x128xf32>
    %81 = tpu.matmul %79, %80, %cst_43 {dimension_numbers = #tpu.dot_dimension_numbers<[1], [0], [0], [1], [0, 0, 1, 1], [], []>} : vector<128x128xbf16>, vector<128x128xbf16>, vector<128x128xf32> -> vector<128x128xf32>
    %c0_44 = arith.constant 0 : index
    %c0_45 = arith.constant 0 : index
    %82 = vector.load %arg13[%c0_44, %c0_45] : memref<1x128xf32, #tpu.memory_space<vmem>>, vector<1x128xf32>
    %83 = vector.broadcast %82 : vector<1x128xf32> to vector<128x128xf32>
    %84 = arith.addf %81, %83 : vector<128x128xf32>
    %c0_46 = arith.constant 0 : index
    %c0_47 = arith.constant 0 : index
    %85 = vector.load %arg14[%c0_46, %c0_47] : memref<128x128xf32, #tpu.memory_space<vmem>>, vector<128x128xf32>
    tpu.vector_store %arg14[%c0_46, %c0_47], %84 {strides = array<i32>} : memref<128x128xf32, #tpu.memory_space<vmem>>, vector<128x128xf32>,
    return
  }
  func.func @transform_0(%arg0: i32) -> (i32, i32) {
    %c0_i32 = arith.constant 0 : i32
    %c0_i32_0 = arith.constant 0 : i32
    %c0_i32_1 = arith.constant 0 : i32
    return %c0_i32, %c0_i32_0 : i32, i32
  }
  func.func @transform_1(%arg0: i32) -> (i32, i32) {
    %c0_i32 = arith.constant 0 : i32
    %c0_i32_0 = arith.constant 0 : i32
    %c0_i32_1 = arith.constant 0 : i32
    return %c0_i32, %c0_i32_0 : i32, i32
  }
  func.func @transform_2(%arg0: i32) -> (i32, i32) {
    %c0_i32 = arith.constant 0 : i32
    %c0_i32_0 = arith.constant 0 : i32
    %c0_i32_1 = arith.constant 0 : i32
    return %c0_i32, %c0_i32_0 : i32, i32
  }
  func.func @transform_3(%arg0: i32) -> (i32, i32) {
    %c0_i32 = arith.constant 0 : i32
    %c0_i32_0 = arith.constant 0 : i32
    %c0_i32_1 = arith.constant 0 : i32
    return %c0_i32, %c0_i32_0 : i32, i32
  }
  func.func @transform_4(%arg0: i32) -> (i32, i32) {
    %c0_i32 = arith.constant 0 : i32
    %c0_i32_0 = arith.constant 0 : i32
    %c0_i32_1 = arith.constant 0 : i32
    return %c0_i32, %c0_i32_0 : i32, i32
  }
  func.func @transform_5(%arg0: i32) -> (i32, i32) {
    %c0_i32 = arith.constant 0 : i32
    %c0_i32_0 = arith.constant 0 : i32
    %c0_i32_1 = arith.constant 0 : i32
    return %c0_i32, %c0_i32_0 : i32, i32
  }
  func.func @transform_6(%arg0: i32) -> (i32, i32) {
    %c0_i32 = arith.constant 0 : i32
    %c0_i32_0 = arith.constant 0 : i32
    %c0_i32_1 = arith.constant 0 : i32
    return %c0_i32, %c0_i32_0 : i32, i32
  }
  func.func @transform_7(%arg0: i32) -> (i32, i32) {
    %c0_i32 = arith.constant 0 : i32
    %c0_i32_0 = arith.constant 0 : i32
    %c0_i32_1 = arith.constant 0 : i32
    return %c0_i32, %c0_i32_0 : i32, i32
  }
  func.func @transform_8(%arg0: i32) -> (i32, i32) {
    %c0_i32 = arith.constant 0 : i32
    %c0_i32_0 = arith.constant 0 : i32
    %c0_i32_1 = arith.constant 0 : i32
    return %c0_i32, %c0_i32_0 : i32, i32
  }
  func.func @transform_9(%arg0: i32) -> (i32, i32) {
    %c0_i32 = arith.constant 0 : i32
    %c0_i32_0 = arith.constant 0 : i32
    %c0_i32_1 = arith.constant 0 : i32
    return %c0_i32, %c0_i32_0 : i32, i32
  }
  func.func @transform_10(%arg0: i32) -> (i32, i32) {
    %c0_i32 = arith.constant 0 : i32
    %c0_i32_0 = arith.constant 0 : i32
    %c0_i32_1 = arith.constant 0 : i32
    return %c0_i32, %c0_i32_0 : i32, i32
  }
  func.func @transform_11(%arg0: i32) -> (i32, i32) {
    %c0_i32 = arith.constant 0 : i32
    %c0_i32_0 = arith.constant 0 : i32
    %c0_i32_1 = arith.constant 0 : i32
    return %c0_i32, %c0_i32_0 : i32, i32
  }
  func.func @transform_12(%arg0: i32) -> (i32, i32) {
    %c0_i32 = arith.constant 0 : i32
    %c0_i32_0 = arith.constant 0 : i32
    %c0_i32_1 = arith.constant 0 : i32
    return %c0_i32, %c0_i32_0 : i32, i32
  }
  func.func @transform_13(%arg0: i32) -> (i32, i32) {
    %c0_i32 = arith.constant 0 : i32
    %c0_i32_0 = arith.constant 0 : i32
    %c0_i32_1 = arith.constant 0 : i32
    return %c0_i32, %c0_i32_0 : i32, i32
  }
}

</mosaic_0001>

<bundles_post_ra>
// kernel: tpu_custom_call.1
= control target key start
LH: loop header
LB: loop body
LE: loop exit
PB: predicated region body
PF: predicated region fallthrough
CT: control target
= control target key end

     0   :  { %18 = vsyncpa [#allocation3], 0  ;;  %s2939_s0 = inlined_call_operand.hbm [shape: bf16[128,128], index: 0, kind: input, shape index: {}]   ;;  %s2940_s1 = inlined_call_operand.hbm [shape: bf16[128,128], index: 1, kind: input, shape index: {}]   ;;  %s2941_s2 = inlined_call_operand.vmem [shape: f32[1,128], index: 2, kind: input, shape index: {}]   ;;  %s2942_s3 = inlined_call_operand.vmem [shape: f32[1,128], index: 3, kind: input, shape index: {}]   ;;  %s2943_s4 = inlined_call_operand.vmem [shape: f32[1,128], index: 4, kind: input, shape index: {}]   ;;  %s2944_s5 = inlined_call_operand.hbm [shape: bf16[128,128], index: 5, kind: input, shape index: {}]   ;;  %s2945_s6 = inlined_call_operand.vmem [shape: f32[1,128], index: 6, kind: input, shape index: {}]   ;;  %s2946_s7 = inlined_call_operand.vmem [shape: f32[1,128], index: 7, kind: input, shape index: {}]   ;;  %s2947_s8 = inlined_call_operand.vmem [shape: f32[1,128], index: 8, kind: input, shape index: {}]   ;;  %s2948_s9 = inlined_call_operand.hbm [shape: bf16[128,128], index: 9, kind: input, shape index: {}]   ;;  %s2949_s10 = inlined_call_operand.vmem [shape: f32[1,128], index: 10, kind: input, shape index: {}]   ;;  %s2950_s11 = inlined_call_operand.hbm [shape: bf16[128,128], index: 11, kind: input, shape index: {}]   ;;  %s2951_s12 = inlined_call_operand.vmem [shape: f32[1,128], index: 12, kind: input, shape index: {}]   ;;  %s2952_s13 = inlined_call_operand.hbm [shape: f32[128,128], index: 13, kind: output, shape index: {}]  }
   0x1   :  { %19 = vsyncpa [#allocation6], 0 }
   0x2   :  { %20 = vsyncpa [#allocation9], 0 }
   0x3   :  { %21 = vsyncpa [#allocation4], 0  ;;  %s39_s27 = sshll.u32 %s2940_s1, 4  ;;  %s2113_s28 = smov [#allocation5]   ;;  %s40_s27 = int_to_ptr.hbm [resolvable:$true] %s39_s27 }
   0x4   :  { %s41_s29 = sshll.u32 %s2113_s28, 4  ;;  %s77_s15 = sshll.u32 %s2948_s9, 4  ;;  %s42_s29 = int_to_ptr.vmem [resolvable:$true] %s41_s29  ;;  %s78_s15 = int_to_ptr.hbm [resolvable:$true] %s77_s15 }
   0x5   :  { %s2114_s16 = smov 64   ;;  %s2115_s17 = smov 4  }
   0x6   :  { %47 = dma.hbm_to_vmem [thread:$0]  %s40_s27, 1024, %s42_s29, [#allocation6], %s2114_s16, %s2114_s16, %s2115_s17  }
   0x7   :  { %s2116_s18 = smov [#allocation8]   ;;  %s26_s22 = sshll.u32 %s2939_s0, 4  ;;  %s27_s22 = int_to_ptr.hbm [resolvable:$true] %s26_s22 }
   0x8   :  { %s79_s19 = sshll.u32 %s2116_s18, 4  ;;  %s58_s24 = sshll.u32 %s2944_s5, 4  ;;  %s80_s19 = int_to_ptr.vmem [resolvable:$true] %s79_s19  ;;  %s59_s24 = int_to_ptr.hbm [resolvable:$true] %s58_s24 }
   0x9   :  { %85 = dma.hbm_to_vmem [thread:$0]  %s78_s15, 1024, %s80_s19, [#allocation9], %s2114_s16, %s2114_s16, %s2115_s17  }
   0xa   :  { %s2117_s25 = smov [#allocation2]   ;;  %s2118_s9 = smov [#allocation7]  }
   0xb   :  { %s28_s26 = sshll.u32 %s2117_s25, 4  ;;  %s60_s27 = sshll.u32 %s2118_s9, 4  ;;  %s29_s26 = int_to_ptr.vmem [resolvable:$true] %s28_s26  ;;  %s61_s27 = int_to_ptr.vmem [resolvable:$true] %s60_s27 }
   0xc   :  { %34 = dma.hbm_to_vmem [thread:$0]  %s27_s22, 1024, %s29_s26, [#allocation3], %s2114_s16, %s2114_s16, %s2115_s17  }
   0xd   :  { %s92_s30 = sshll.u32 %s2950_s11, 4  ;;  %s2119_s0 = smov [#allocation10]   ;;  %s93_s30 = int_to_ptr.hbm [resolvable:$true] %s92_s30 }
   0xe   :  { %66 = dma.hbm_to_vmem [thread:$0]  %s59_s24, 1024, %s61_s27, [#allocation6], %s2114_s16, %s2114_s16, %s2115_s17  }
   0xf   :  { %s94_s14 = sshll.u32 %s2119_s0, 4  ;;  %s95_s14 = int_to_ptr.vmem [resolvable:$true] %s94_s14 }
  0x10   :  { %100 = dma.hbm_to_vmem [thread:$0]  %s93_s30, 1024, %s95_s14, [#allocation9], %s2114_s16, %s2114_s16, %s2115_s17  }
  0x11   :  { %2105 = dma.done.wait [#allocation3], 1024  }
  0x12   :  { %2106 = vsyncadd [#allocation3], 4294966272 }
  0x13   :  { %2107 = dma.done.wait [#allocation6], 2048  }
  0x14   :  { %2108 = vsyncadd [#allocation6], 4294965248 }
  0x15   :  { %2109 = dma.done.wait [#allocation9], 2048  }
  0x16   :  { %2110 = vsyncadd [#allocation9], 4294965248  ;;  %v1819_v0 = vld [vmem:[#allocation5 + $0x38] sm:$0xff]  ;;  %v1818_v1 = vld [vmem:[#allocation5 + $0x30] sm:$0xff]  ;;  %s1629_s24 = sshll.u32 %s2952_s13, 4  ;;  %s2122_s25 = smov 128   ;;  %s1630_s24 = int_to_ptr.hbm [resolvable:$true] %s1629_s24 }
  0x17   :  { %255 = vmatpush.bf16.msra.mxu0 %v1819_v0  ;;  %1844 = vmatpush.bf16.msra.mxu1 %v1819_v0  ;;  %v1817_v2 = vld [vmem:[#allocation5 + $0x28] sm:$0xff]  ;;  %v1816_v3 = vld [vmem:[#allocation5 + $0x20] sm:$0xff]  ;;  %v1815_v4 = vld [vmem:[#allocation5 + $0x18] sm:$0xff]  ;;  %s2123_s26 = smov 8  }
  0x18   :  { %1845 = vmatpush.bf16.msra.mxu2 %v1819_v0  ;;  %1846 = vmatpush.bf16.msra.mxu3 %v1819_v0  ;;  %v1814_v5 = vld [vmem:[#allocation5 + $0x10] sm:$0xff]  ;;  %v1813_v6 = vld [vmem:[#allocation5 + $0x8] sm:$0xff]  ;;  %v1812_v7 = vld [vmem:[#allocation5] sm:$0xff] }
  0x19   :  { %v1804_v8 = vld [vmem:[#allocation2] sm:$0xff]  ;;  %v1806_v9 = vld [vmem:[#allocation2 + $0x10] sm:$0xff]  ;;  %v1805_v12 = vld [vmem:[#allocation2 + $0x8] sm:$0xff] }
  0x1a   :  { %v1808_v10 = vld [vmem:[#allocation2 + $0x20] sm:$0xff]  ;;  %v1810_v11 = vld [vmem:[#allocation2 + $0x30] sm:$0xff]  ;;  %v1807_v13 = vld [vmem:[#allocation2 + $0x18] sm:$0xff] }
  0x1b   :  { %256 = vmatpush.bf16.msra.mxu0 %v1818_v1  ;;  %1847 = vmatpush.bf16.msra.mxu1 %v1818_v1  ;;  %v1809_v14 = vld [vmem:[#allocation2 + $0x28] sm:$0xff]  ;;  %v1811_v15 = vld [vmem:[#allocation2 + $0x38] sm:$0xff]  ;;  %v2212_v16 = vld [vmem:[%s2941_s2] ss:$0 sm:$0xff] }
  0x1c   :  { %1848 = vmatpush.bf16.msra.mxu2 %v1818_v1  ;;  %1849 = vmatpush.bf16.msra.mxu3 %v1818_v1  ;;  %v2120_v1 = vmov 64.0  }
  0x1d   :  { %1887 = vrcp.f32 %v2120_v1 }
  0x1f   :  { %257 = vmatpush.bf16.msra.mxu0 %v1817_v2  ;;  %1850 = vmatpush.bf16.msra.mxu1 %v1817_v2 }
  0x20   :  { %1851 = vmatpush.bf16.msra.mxu2 %v1817_v2  ;;  %1852 = vmatpush.bf16.msra.mxu3 %v1817_v2 }
  0x23   :  { %258 = vmatpush.bf16.msra.mxu0 %v1816_v3  ;;  %1853 = vmatpush.bf16.msra.mxu1 %v1816_v3  ;;  %v1888_v2 = vpop.eup %1887 }
  0x24   :  { %1854 = vmatpush.bf16.msra.mxu2 %v1816_v3  ;;  %1855 = vmatpush.bf16.msra.mxu3 %v1816_v3  ;;  %v339_v3 = vmul.f32 64.0, %v1888_v2  ;;  %vm343_vm0 = vweird.f32 %v1888_v2 }
  0x27   :  { %259 = vmatpush.bf16.msra.mxu0 %v1815_v4  ;;  %1856 = vmatpush.bf16.msra.mxu1 %v1815_v4 }
  0x28   :  { %1857 = vmatpush.bf16.msra.mxu2 %v1815_v4  ;;  %1858 = vmatpush.bf16.msra.mxu3 %v1815_v4  ;;  %v1827_v4 = vld [vmem:[#allocation7 + $0x38] sm:$0xff] }
  0x2b   :  { %260 = vmatpush.bf16.msra.mxu0 %v1814_v5  ;;  %1859 = vmatpush.bf16.msra.mxu1 %v1814_v5 }
  0x2c   :  { %1860 = vmatpush.bf16.msra.mxu2 %v1814_v5  ;;  %1861 = vmatpush.bf16.msra.mxu3 %v1814_v5  ;;  %v340_v5 = vsub.f32 1.0, %v339_v3 }
  0x2f   :  { %261 = vmatpush.bf16.msra.mxu0 %v1813_v6  ;;  %1862 = vmatpush.bf16.msra.mxu1 %v1813_v6 }
  0x30   :  { %1863 = vmatpush.bf16.msra.mxu2 %v1813_v6  ;;  %1864 = vmatpush.bf16.msra.mxu3 %v1813_v6  ;;  %v1826_v6 = vld [vmem:[#allocation7 + $0x30] sm:$0xff] }
  0x33   :  { %262 = vmatpush.bf16.msra.mxu0 %v1812_v7  ;;  %1865 = vmatpush.bf16.msra.mxu1 %v1812_v7 }
  0x34   :  { %1866 = vmatpush.bf16.msra.mxu2 %v1812_v7  ;;  %1867 = vmatpush.bf16.msra.mxu3 %v1812_v7  ;;  %v341_v7 = vmul.f32 %v1888_v2, %v340_v5 }
  0x36   :  { %263 = vmatmul.bf16.vlgmr.msra.gmra.mxu0 %v1804_v8  ;;  %273 = vmatmul.bf16.vlgmr.msra.gmra.mxu1 %v1806_v9  ;;  %v1825_v8 = vld [vmem:[#allocation7 + $0x28] sm:$0xff]  ;;  %v342_v9 = vadd.f32 %v1888_v2, %v341_v7 }
  0x37   :  { %283 = vmatmul.bf16.vlgmr.msra.gmra.mxu2 %v1808_v10  ;;  %293 = vmatmul.bf16.vlgmr.msra.gmra.mxu3 %v1810_v11  ;;  %v1824_v10 = vld [vmem:[#allocation7 + $0x20] sm:$0xff] }
  0x38   :  { %807 = vmatpush.bf16.msrb.mxu1 %v1827_v4  ;;  %v2310_v11 = vsel %vm343_vm0, %v1888_v2, %v342_v9 }
  0x3c   :  { %808 = vmatpush.bf16.msrb.mxu1 %v1826_v6 }
  0x40   :  { %809 = vmatpush.bf16.msrb.mxu1 %v1825_v8 }
  0x44   :  { %810 = vmatpush.bf16.msrb.mxu1 %v1824_v10 }
  0x46   :  { %268 = vmatmul.bf16.gmra.mxu0 %v1805_v12  ;;  %278 = vmatmul.bf16.gmra.mxu1 %v1807_v13  ;;  %v1823_v13 = vld [vmem:[#allocation7 + $0x18] sm:$0xff] }
  0x47   :  { %288 = vmatmul.bf16.gmra.mxu2 %v1809_v14  ;;  %298 = vmatmul.bf16.gmra.mxu3 %v1811_v15 }
  0x48   :  { %811 = vmatpush.bf16.msrb.mxu1 %v1823_v13 }
  0xb3   :  { %v264_v17 = vpop.f32.mrf.mxu0  ;;  %v274_v20 = vpop.f32.mrf.mxu1 }
  0xb4   :  { %v2215_v18 = vadd.f32 %v2212_v16, %v264_v17  ;;  %v2242_v34 = vadd.f32 %v2212_v16, %v274_v20 }
  0xb6   :  { %306 = vadd.xlane.f32.xlu0 %v2215_v18  ;;  %v361_v19 = vmul.f32 %v2215_v18, %v2215_v18  ;;  %v365_v36 = vmul.f32 %v2242_v34, %v2242_v34 }
  0xb8   :  { %377 = vadd.xlane.f32.xlu1 %v361_v19  ;;  %v1822_v19 = vld [vmem:[#allocation7 + $0x10] sm:$0xff] }
  0xb9   :  { %812 = vmatpush.bf16.msrb.mxu1 %v1822_v19 }
  0xba   :  { %v284_v28 = vpop.f32.mrf.mxu2  ;;  %v294_v46 = vpop.f32.mrf.mxu3 }
  0xbb   :  { %v266_v21 = vpop.f32.mrf.mxu0  ;;  %v276_v24 = vpop.f32.mrf.mxu1  ;;  %v2260_v43 = vadd.f32 %v2212_v16, %v284_v28  ;;  %v2282_v53 = vadd.f32 %v2212_v16, %v294_v46 }
  0xbc   :  { %v2221_v22 = vadd.f32 %v2212_v16, %v266_v21  ;;  %v2236_v32 = vadd.f32 %v2212_v16, %v276_v24  ;;  %v1821_v24 = vld [vmem:[#allocation7 + $0x8] sm:$0xff] }
  0xbd   :  { %v369_v45 = vmul.f32 %v2260_v43, %v2260_v43  ;;  %v373_v60 = vmul.f32 %v2282_v53, %v2282_v53  ;;  %813 = vmatpush.bf16.msrb.mxu1 %v1821_v24 }
  0xbe   :  { %308 = vadd.xlane.f32.xlu0 %v2221_v22  ;;  %v362_v23 = vmul.f32 %v2221_v22, %v2221_v22  ;;  %v366_v40 = vmul.f32 %v2236_v32, %v2236_v32 }
  0xc0   :  { %379 = vadd.xlane.f32.xlu1 %v362_v23 }
  0xc2   :  { %v286_v38 = vpop.f32.mrf.mxu2  ;;  %v296_v52 = vpop.f32.mrf.mxu3 }
  0xc3   :  { %v269_v25 = vpop.f32.mrf.mxu0  ;;  %v279_v30 = vpop.f32.mrf.mxu1  ;;  %v2268_v47 = vadd.f32 %v2212_v16, %v286_v38  ;;  %v2289_v55 = vadd.f32 %v2212_v16, %v296_v52 }
  0xc4   :  { %v2227_v26 = vadd.f32 %v2212_v16, %v269_v25  ;;  %v2246_v35 = vadd.f32 %v2212_v16, %v279_v30 }
  0xc5   :  { %v370_v50 = vmul.f32 %v2268_v47, %v2268_v47  ;;  %v374_v58 = vmul.f32 %v2289_v55, %v2289_v55 }
  0xc6   :  { %310 = vadd.xlane.f32.xlu2 %v2227_v26  ;;  %v363_v27 = vmul.f32 %v2227_v26, %v2227_v26  ;;  %v367_v44 = vmul.f32 %v2246_v35, %v2246_v35 }
  0xc8   :  { %381 = vadd.xlane.f32.xlu0 %v363_v27 }
  0xca   :  { %v289_v42 = vpop.f32.mrf.mxu2  ;;  %v299_v57 = vpop.f32.mrf.mxu3 }
  0xcb   :  { %v271_v29 = vpop.f32.mrf.mxu0  ;;  %v281_v37 = vpop.f32.mrf.mxu1  ;;  %v2278_v51 = vadd.f32 %v2212_v16, %v289_v42  ;;  %v2297_v59 = vadd.f32 %v2212_v16, %v299_v57 }
  0xcc   :  { %v2233_v31 = vadd.f32 %v2212_v16, %v271_v29  ;;  %v2253_v39 = vadd.f32 %v2212_v16, %v281_v37 }
  0xcd   :  { %v371_v54 = vmul.f32 %v2278_v51, %v2278_v51  ;;  %v375_v61 = vmul.f32 %v2297_v59, %v2297_v59 }
  0xce   :  { %312 = vadd.xlane.f32.xlu2 %v2233_v31  ;;  %v364_v33 = vmul.f32 %v2233_v31, %v2233_v31  ;;  %v368_v41 = vmul.f32 %v2253_v39, %v2253_v39 }
  0xd0   :  { %316 = vadd.xlane.f32.xlu0 %v2236_v32  ;;  %383 = vadd.xlane.f32.xlu1 %v364_v33  ;;  %v1820_v33 = vld [vmem:[#allocation7] sm:$0xff] }
  0xd1   :  { %814 = vmatpush.bf16.msrb.mxu1 %v1820_v33 }
  0xd2   :  { %v291_v48 = vpop.f32.mrf.mxu2  ;;  %v301_v62 = vpop.f32.mrf.mxu3 }
  0xd3   :  { %v2272_v49 = vadd.f32 %v2212_v16, %v291_v48  ;;  %v2305_v63 = vadd.f32 %v2212_v16, %v301_v62 }
  0xd5   :  { %v372_v56 = vmul.f32 %v2272_v49, %v2272_v49  ;;  %v376_v0 = vmul.f32 %v2305_v63, %v2305_v63 }
  0xd6   :  { %314 = vadd.xlane.f32.xlu2 %v2242_v34 }
  0xd8   :  { %318 = vadd.xlane.f32.xlu0 %v2246_v35  ;;  %385 = vadd.xlane.f32.xlu1 %v365_v36 }
  0xde   :  { %387 = vadd.xlane.f32.xlu2 %v366_v40 }
  0xe0   :  { %391 = vadd.xlane.f32.xlu0 %v368_v41  ;;  %320 = vadd.xlane.f32.xlu1 %v2253_v39 }
  0xe6   :  { %389 = vadd.xlane.f32.xlu2 %v367_v44 }
  0xe8   :  { %393 = vadd.xlane.f32.xlu0 %v369_v45  ;;  %322 = vadd.xlane.f32.xlu1 %v2260_v43 }
  0xee   :  { %324 = vadd.xlane.f32.xlu2 %v2268_v47 }
  0xf0   :  { %328 = vadd.xlane.f32.xlu0 %v2272_v49  ;;  %395 = vadd.xlane.f32.xlu1 %v370_v50 }
  0xf6   :  { %326 = vadd.xlane.f32.xlu2 %v2278_v51 }
  0xf8   :  { %330 = vadd.xlane.f32.xlu0 %v2282_v53  ;;  %397 = vadd.xlane.f32.xlu1 %v371_v54 }
  0xfe   :  { %399 = vadd.xlane.f32.xlu2 %v372_v56 }
 0x100   :  { %332 = vadd.xlane.f32.xlu1 %v2289_v55  ;;  %403 = vadd.xlane.f32.xlu0 %v374_v58 }
 0x106   :  { %401 = vadd.xlane.f32.xlu2 %v373_v60 }
 0x108   :  { %334 = vadd.xlane.f32.xlu1 %v2297_v59  ;;  %405 = vadd.xlane.f32.xlu0 %v375_v61 }
 0x10e   :  { %336 = vadd.xlane.f32.xlu2 %v2305_v63 }
 0x110   :  { %407 = vadd.xlane.f32.xlu1 %v376_v0 }
 0x129   :  { %v307_v12 = vpop.xlane.xlu0 %306 }
 0x12a   :  { %v345_v14 = vmul.f32 %v2310_v11, %v307_v12 }
 0x12b   :  { %v378_v15 = vpop.xlane.xlu1 %377 }
 0x12c   :  { %v425_v16 = vmul.f32 %v345_v14, %v345_v14  ;;  %v409_v17 = vmul.f32 %v378_v15, %v2310_v11  ;;  %v473_v8 = vsub.f32 %v2215_v18, %v345_v14 }
 0x12e   :  { %v441_v20 = vsub.f32 %v409_v17, %v425_v16 }
 0x130   :  { %v457_v21 = vmax.f32 %v441_v20, 0.0  ;;  %v2344_v20 = vld [vmem:[%s2942_s3] ss:$0 sm:$0xff] }
 0x131   :  { %v309_v23 = vpop.xlane.xlu0 %308 }
 0x132   :  { %v489_v25 = vadd.f32 1e-05, %v457_v21  ;;  %v2315_v27 = vmul.f32 %v2310_v11, %v309_v23 }
 0x133   :  { %v380_v28 = vpop.xlane.xlu1 %379 }
 0x134   :  { %1889 = vrsqrt.f32 %v489_v25  ;;  %v426_v29 = vmul.f32 %v2315_v27, %v2315_v27  ;;  %v410_v30 = vmul.f32 %v380_v28, %v2310_v11  ;;  %vm511_vm2 = vweird.f32 %v489_v25 }
 0x136   :  { %v442_v36 = vsub.f32 %v410_v30, %v426_v29  ;;  %v474_v30 = vsub.f32 %v2221_v22, %v2315_v27 }
 0x138   :  { %v458_v37 = vmax.f32 %v442_v36, 0.0 }
 0x139   :  { %v311_v38 = vpop.xlane.xlu2 %310 }
 0x13a   :  { %v1890_v40 = vpop.eup %1889  ;;  %v2321_v41 = vmul.f32 %v2310_v11, %v311_v38  ;;  %v490_v44 = vadd.f32 1e-05, %v458_v37  ;;  %v2362_v37 = vld [vmem:[%s2943_s4] ss:$0 sm:$0xff] }
 0x13b   :  { %v506_v42 = vmul.f32 %v1890_v40, %v489_v25  ;;  %v382_v45 = vpop.xlane.xlu0 %381  ;;  %vm512_vm1 = vweird.f32 %v1890_v40 }
 0x13c   :  { %v427_v46 = vmul.f32 %v2321_v41, %v2321_v41  ;;  %v411_v48 = vmul.f32 %v382_v45, %v2310_v11  ;;  %1891 = vrsqrt.f32 %v490_v44  ;;  %vm513_vm3 = vmor %vm511_vm2, %vm512_vm1  ;;  %vm521_vm5 = vweird.f32 %v490_v44 }
 0x13d   :  { %v507_v50 = vmul.f32 %v1890_v40, %v506_v42 }
 0x13e   :  { %v443_v52 = vsub.f32 %v411_v48, %v427_v46 }
 0x13f   :  { %v508_v54 = vmul.f32 0.5, %v507_v50 }
 0x140   :  { %v459_v56 = vmax.f32 %v443_v52, 0.0 }
 0x141   :  { %v509_v57 = vsub.f32 1.5, %v508_v54  ;;  %v313_v58 = vpop.xlane.xlu2 %312 }
 0x142   :  { %v2326_v60 = vadd.f32 1e-05, %v459_v56  ;;  %v2329_v61 = vmul.f32 %v2310_v11, %v313_v58  ;;  %v1892_v62 = vpop.eup %1891 }
 0x143   :  { %v510_v0 = vmul.f32 %v1890_v40, %v509_v57  ;;  %v317_v1 = vpop.xlane.xlu0 %316  ;;  %v384_v2 = vpop.xlane.xlu1 %383  ;;  %v516_v3 = vmul.f32 %v1892_v62, %v490_v44  ;;  %vm522_vm4 = vweird.f32 %v1892_v62 }
 0x144   :  { %1893 = vrsqrt.f32 %v2326_v60  ;;  %v428_v4 = vmul.f32 %v2329_v61, %v2329_v61  ;;  %v412_v6 = vmul.f32 %v384_v2, %v2310_v11  ;;  %vm523_vm6 = vmor %vm521_vm5, %vm522_vm4  ;;  %v2365_v42 = vmul.f32 %v2310_v11, %v317_v1 }
 0x145   :  { %v517_v5 = vmul.f32 %v1892_v62, %v516_v3  ;;  %v514_v7 = vsel %vm513_vm3, %v1890_v40, %v510_v0  ;;  %vm531_vm8 = vweird.f32 %v2326_v60 }
 0x146   :  { %v444_v10 = vsub.f32 %v412_v6, %v428_v4  ;;  %v665_v19 = vmul.f32 %v514_v7, %v473_v8  ;;  %v430_v22 = vmul.f32 %v2365_v42, %v2365_v42 }
 0x147   :  { %v518_v9 = vmul.f32 0.5, %v517_v5 }
 0x148   :  { %v460_v16 = vmax.f32 %v444_v10, 0.0  ;;  %v684_v36 = vmul.f32 %v2344_v20, %v665_v19 }
 0x149   :  { %v315_v12 = vpop.xlane.xlu2 %314  ;;  %v519_v15 = vsub.f32 1.5, %v518_v9 }
 0x14a   :  { %v2336_v13 = vpop.eup %1893  ;;  %v2339_v17 = vmul.f32 %v2310_v11, %v315_v12  ;;  %v2348_v24 = vadd.f32 1e-05, %v460_v16  ;;  %v703_v52 = vadd.f32 %v2362_v37, %v684_v36 }
 0x14b   :  { %v526_v18 = vmul.f32 %v2336_v13, %v2326_v60  ;;  %v319_v14 = vpop.xlane.xlu0 %318  ;;  %v386_v21 = vpop.xlane.xlu1 %385  ;;  %v520_v23 = vmul.f32 %v1892_v62, %v519_v15  ;;  %vm532_vm7 = vweird.f32 %v2336_v13 }
 0x14c   :  { %v429_v25 = vmul.f32 %v2339_v17, %v2339_v17  ;;  %v413_v29 = vmul.f32 %v386_v21, %v2310_v11  ;;  %1895 = vrsqrt.f32 %v2348_v24  ;;  %v2383_v5 = vmul.f32 %v2310_v11, %v319_v14  ;;  %vm2391_vm9 = vmor %vm531_vm8, %vm532_vm7 }
 0x14d   :  { %v527_v28 = vmul.f32 %v2336_v13, %v526_v18  ;;  %v524_v33 = vsel %vm523_vm6, %v1892_v62, %v520_v23  ;;  %v719_v8 = vmax.f32 %v703_v52, 0.0  ;;  %v475_v23 = vsub.f32 %v2227_v26, %v2321_v41 }
 0x14e   :  { %v445_v40 = vsub.f32 %v413_v29, %v429_v25  ;;  %v666_v44 = vmul.f32 %v524_v33, %v474_v30  ;;  %v431_v15 = vmul.f32 %v2383_v5, %v2383_v5  ;;  %vm541_vm11 = vweird.f32 %v2348_v24 }
 0x14f   :  { %v528_v38 = vmul.f32 0.5, %v527_v28 }
 0x150   :  { %v461_v46 = vmax.f32 %v445_v40, 0.0  ;;  %v685_v50 = vmul.f32 %v2344_v20, %v666_v44 }
 0x151   :  { %v529_v45 = vsub.f32 1.5, %v528_v38  ;;  %v388_v48 = vpop.xlane.xlu2 %387 }
 0x152   :  { %v414_v27 = vmul.f32 %v388_v48, %v2310_v11  ;;  %v2373_v54 = vadd.f32 1e-05, %v461_v46  ;;  %v1896_v58 = vpop.eup %1895  ;;  %v704_v2 = vadd.f32 %v2362_v37, %v685_v50  ;;  %v476_v46 = vsub.f32 %v2233_v31, %v2329_v61 }
 0x153   :  { %v392_v56 = vpop.xlane.xlu0 %391  ;;  %v321_v57 = vpop.xlane.xlu1 %320  ;;  %v530_v3 = vmul.f32 %v2336_v13, %v529_v45  ;;  %v536_v4 = vmul.f32 %v1896_v58, %v2348_v24  ;;  %vm542_vm10 = vweird.f32 %v1896_v58 }
 0x154   :  { %v446_v62 = vsub.f32 %v414_v27, %v430_v22  ;;  %v416_v0 = vmul.f32 %v392_v56, %v2310_v11  ;;  %v2377_v1 = vmul.f32 %v2310_v11, %v321_v57  ;;  %1897 = vrsqrt.f32 %v2373_v54  ;;  %vm543_vm12 = vmor %vm541_vm11, %vm542_vm10 }
 0x155   :  { %v720_v9 = vmax.f32 %v704_v2, 0.0  ;;  %v537_v10 = vmul.f32 %v1896_v58, %v536_v4  ;;  %v534_v60 = vsel %vm2391_vm9, %v2336_v13, %v530_v3  ;;  %vm551_vm14 = vweird.f32 %v2373_v54 }
 0x156   :  { %v462_v6 = vmax.f32 %v446_v62, 0.0  ;;  %v432_v7 = vmul.f32 %v2377_v1, %v2377_v1  ;;  %v667_v44 = vmul.f32 %v534_v60, %v475_v23 }
 0x157   :  { %v735_v18 = vpack.c.bf16 %v720_v9, %v719_v8  ;;  %v538_v14 = vmul.f32 0.5, %v537_v10 }
 0x158   :  { %v2397_v16 = vadd.f32 1e-05, %v462_v6  ;;  %v448_v19 = vsub.f32 %v416_v0, %v432_v7  ;;  %v686_v62 = vmul.f32 %v2344_v20, %v667_v44 }
 0x159   :  { %v390_v21 = vpop.xlane.xlu2 %389  ;;  %815 = vmatmul.bf16.vlgmr.msrb.gmra.mxu1 %v735_v18  ;;  %v539_v30 = vsub.f32 1.5, %v538_v14 }
 0x15a   :  { %1899 = vrsqrt.f32 %v2397_v16  ;;  %v464_v25 = vmax.f32 %v448_v19, 0.0  ;;  %v415_v28 = vmul.f32 %v390_v21, %v2310_v11  ;;  %v2406_v29 = vpop.eup %1897  ;;  %v705_v10 = vadd.f32 %v2362_v37, %v686_v62 }
 0x15b   :  { %v323_v33 = vpop.xlane.xlu1 %322  ;;  %v546_v36 = vmul.f32 %v2406_v29, %v2373_v54  ;;  %v394_v40 = vpop.xlane.xlu0 %393  ;;  %v540_v26 = vmul.f32 %v1896_v58, %v539_v30  ;;  %vm552_vm13 = vweird.f32 %v2406_v29  ;;  %vm561_vm1 = vweird.f32 %v2397_v16 }
 0x15c   :  { %v2410_v38 = vadd.f32 1e-05, %v464_v25  ;;  %v447_v13 = vsub.f32 %v415_v28, %v431_v15  ;;  %v417_v41 = vmul.f32 %v394_v40, %v2310_v11  ;;  %v2415_v45 = vmul.f32 %v2310_v11, %v323_v33  ;;  %vm2447_vm0 = vmor %vm551_vm14, %vm552_vm13 }
 0x15d   :  { %v547_v48 = vmul.f32 %v2406_v29, %v546_v36  ;;  %v544_v50 = vsel %vm543_vm12, %v1896_v58, %v540_v26  ;;  %v721_v36 = vmax.f32 %v705_v10, 0.0 }
 0x15e   :  { %1901 = vrsqrt.f32 %v2410_v38  ;;  %v463_v22 = vmax.f32 %v447_v13, 0.0  ;;  %v433_v27 = vmul.f32 %v2415_v45, %v2415_v45  ;;  %v668_v57 = vmul.f32 %v544_v50, %v476_v46 }
 0x15f   :  { %v548_v24 = vmul.f32 0.5, %v547_v48  ;;  %vm581_vm4 = vweird.f32 %v2410_v38 }
 0x160   :  { %v1900_v52 = vpop.eup %1899  ;;  %v2423_v56 = vadd.f32 1e-05, %v463_v22  ;;  %v449_v31 = vsub.f32 %v417_v41, %v433_v27  ;;  %v687_v58 = vmul.f32 %v2344_v20, %v668_v57  ;;  %v477_v41 = vsub.f32 %v2242_v34, %v2339_v17 }
 0x161   :  { %v556_v0 = vmul.f32 %v1900_v52, %v2397_v16  ;;  %v325_v61 = vpop.xlane.xlu2 %324  ;;  %v549_v2 = vsub.f32 1.5, %v548_v24  ;;  %vm562_vm15 = vweird.f32 %v1900_v52  ;;  %v478_v27 = vsub.f32 %v2236_v32, %v2365_v42 }
 0x162   :  { %1903 = vrsqrt.f32 %v2423_v56  ;;  %v2429_v3 = vmul.f32 %v2310_v11, %v325_v61  ;;  %v465_v8 = vmax.f32 %v449_v31, 0.0  ;;  %v706_v14 = vadd.f32 %v2362_v37, %v687_v58  ;;  %vm2462_vm2 = vmor %vm561_vm1, %vm562_vm15 }
 0x163   :  { %v557_v4 = vmul.f32 %v1900_v52, %v556_v0  ;;  %v396_v6 = vpop.xlane.xlu1 %395  ;;  %v550_v12 = vmul.f32 %v2406_v29, %v549_v2  ;;  %v329_v23 = vpop.xlane.xlu0 %328  ;;  %vm571_vm6 = vweird.f32 %v2423_v56 }
 0x164   :  { %v2432_v7 = vpop.eup %1901  ;;  %v434_v9 = vmul.f32 %v2429_v3, %v2429_v3  ;;  %v418_v18 = vmul.f32 %v396_v6, %v2310_v11  ;;  %v2451_v30 = vadd.f32 1e-05, %v465_v8  ;;  %v722_v13 = vmax.f32 %v706_v14, 0.0 }
 0x165   :  { %v558_v15 = vmul.f32 0.5, %v557_v4  ;;  %v576_v19 = vmul.f32 %v2432_v7, %v2410_v38  ;;  %v554_v26 = vsel %vm2447_vm0, %v2406_v29, %v550_v12  ;;  %v2481_v42 = vmul.f32 %v2310_v11, %v329_v23 }
 0x166   :  { %v450_v33 = vsub.f32 %v418_v18, %v434_v9  ;;  %v736_v22 = vpack.c.bf16 %v722_v13, %v721_v36  ;;  %1905 = vrsqrt.f32 %v2451_v30  ;;  %v669_v62 = vmul.f32 %v554_v26, %v477_v41 }
 0x167   :  { %v559_v21 = vsub.f32 1.5, %v558_v15  ;;  %v577_v60 = vmul.f32 %v2432_v7, %v576_v19  ;;  %v436_v2 = vmul.f32 %v2481_v42, %v2481_v42  ;;  %vm582_vm5 = vweird.f32 %v2432_v7 }
 0x168   :  { %v2445_v25 = vpop.eup %1903  ;;  %v466_v48 = vmax.f32 %v450_v33, 0.0  ;;  %v688_v6 = vmul.f32 %v2344_v20, %v669_v62  ;;  %v479_v13 = vsub.f32 %v2246_v35, %v2383_v5  ;;  %vm2511_vm8 = vmor %vm581_vm4, %vm582_vm5  ;;  %vm591_vm9 = vweird.f32 %v2451_v30 }
 0x169   :  { %v560_v40 = vmul.f32 %v1900_v52, %v559_v21  ;;  %v566_v54 = vmul.f32 %v2445_v25, %v2423_v56  ;;  %v327_v44 = vpop.xlane.xlu2 %326  ;;  %v578_v50 = vmul.f32 0.5, %v577_v60  ;;  %820 = vmatmul.bf16.gmra.mxu1 %v736_v22  ;;  %vm572_vm3 = vweird.f32 %v2445_v25 }
 0x16a   :  { %v2467_v16 = vmul.f32 %v2310_v11, %v327_v44  ;;  %v2475_v17 = vadd.f32 1e-05, %v466_v48  ;;  %v707_v28 = vadd.f32 %v2362_v37, %v688_v6  ;;  %vm2501_vm7 = vmor %vm571_vm6, %vm572_vm3 }
 0x16b   :  { %v567_v24 = vmul.f32 %v2445_v25, %v566_v54  ;;  %v398_v29 = vpop.xlane.xlu1 %397  ;;  %v564_v34 = vsel %vm2462_vm2, %v1900_v52, %v560_v40  ;;  %v579_v61 = vsub.f32 1.5, %v578_v50  ;;  %v331_v58 = vpop.xlane.xlu0 %330 }
 0x16c   :  { %v435_v57 = vmul.f32 %v2467_v16, %v2467_v16  ;;  %v419_v31 = vmul.f32 %v398_v29, %v2310_v11  ;;  %v670_v32 = vmul.f32 %v564_v34, %v478_v27  ;;  %1907 = vrsqrt.f32 %v2475_v17  ;;  %v2488_v10 = vpop.eup %1905 }
 0x16d   :  { %v568_v0 = vmul.f32 0.5, %v567_v24  ;;  %v580_v19 = vmul.f32 %v2432_v7, %v579_v61  ;;  %v586_v38 = vmul.f32 %v2488_v10, %v2451_v30  ;;  %v2523_v41 = vmul.f32 %v2310_v11, %v331_v58 }
 0x16e   :  { %v451_v4 = vsub.f32 %v419_v31, %v435_v57  ;;  %v689_v9 = vmul.f32 %v2344_v20, %v670_v32  ;;  %v723_v22 = vmax.f32 %v707_v28, 0.0  ;;  %vm592_vm10 = vweird.f32 %v2488_v10 }
 0x16f   :  { %v569_v52 = vsub.f32 1.5, %v568_v0  ;;  %v584_v44 = vsel %vm2511_vm8, %v2432_v7, %v580_v19  ;;  %v587_v27 = vmul.f32 %v2488_v10, %v586_v38  ;;  %v437_v29 = vmul.f32 %v2523_v41, %v2523_v41  ;;  %vm2559_vm13 = vmor %vm591_vm9, %vm592_vm10 }
 0x170   :  { %v708_v14 = vadd.f32 %v2362_v37, %v689_v9  ;;  %v467_v60 = vmax.f32 %v451_v4, 0.0  ;;  %vm601_vm11 = vweird.f32 %v2475_v17  ;;  %v483_v38 = vsub.f32 %v2278_v51, %v2467_v16 }
 0x171   :  { %v400_v8 = vpop.xlane.xlu2 %399  ;;  %v570_v12 = vmul.f32 %v2445_v25, %v569_v52  ;;  %v588_v31 = vmul.f32 0.5, %v587_v27 }
 0x172   :  { %v420_v15 = vmul.f32 %v400_v8, %v2310_v11  ;;  %v2497_v21 = vpop.eup %1907  ;;  %v724_v46 = vmax.f32 %v708_v14, 0.0  ;;  %v2525_v35 = vadd.f32 1e-05, %v467_v60 }
 0x173   :  { %v333_v18 = vpop.xlane.xlu1 %332  ;;  %v596_v36 = vmul.f32 %v2497_v21, %v2475_v17  ;;  %v574_v54 = vsel %vm2501_vm7, %v2445_v25, %v570_v12  ;;  %v480_v25 = vsub.f32 %v2253_v39, %v2377_v1  ;;  %v404_v7 = vpop.xlane.xlu0 %403  ;;  %v589_v8 = vsub.f32 1.5, %v588_v31 }
 0x174   :  { %v452_v23 = vsub.f32 %v420_v15, %v436_v2  ;;  %v2530_v48 = vmul.f32 %v2310_v11, %v333_v18  ;;  %v671_v24 = vmul.f32 %v574_v54, %v479_v13  ;;  %v737_v34 = vpack.c.bf16 %v724_v46, %v723_v22 }
 0x175   :  { %v597_v26 = vmul.f32 %v2497_v21, %v596_v36  ;;  %v672_v62 = vmul.f32 %v584_v44, %v480_v25  ;;  %v422_v1 = vmul.f32 %v404_v7, %v2310_v11  ;;  %vm602_vm12 = vweird.f32 %v2497_v21 }
 0x176   :  { %v468_v56 = vmax.f32 %v452_v23, 0.0  ;;  %v438_v39 = vmul.f32 %v2530_v48, %v2530_v48  ;;  %v690_v61 = vmul.f32 %v2344_v20, %v671_v24  ;;  %v590_v28 = vmul.f32 %v2488_v10, %v589_v8  ;;  %vm2565_vm14 = vmor %vm601_vm11, %vm602_vm12 }
 0x177   :  { %v598_v0 = vmul.f32 0.5, %v597_v26  ;;  %v691_v4 = vmul.f32 %v2344_v20, %v672_v62  ;;  %v482_v26 = vsub.f32 %v2268_v47, %v2429_v3  ;;  %v481_v25 = vsub.f32 %v2260_v43, %v2415_v45 }
 0x178   :  { %v2527_v5 = vadd.f32 1e-05, %v468_v56  ;;  %v454_v58 = vsub.f32 %v422_v1, %v438_v39  ;;  %v709_v9 = vadd.f32 %v2362_v37, %v690_v61  ;;  %v594_v27 = vsel %vm2559_vm13, %v2488_v10, %v590_v28 }
 0x179   :  { %v402_v50 = vpop.xlane.xlu2 %401  ;;  %825 = vmatmul.bf16.gmra.mxu1 %v737_v34  ;;  %v599_v2 = vsub.f32 1.5, %v598_v0  ;;  %v710_v60 = vadd.f32 %v2362_v37, %v691_v4  ;;  %v673_v34 = vmul.f32 %v594_v27, %v481_v25  ;;  %vm611_vm15 = vweird.f32 %v2525_v35 }
 0x17a   :  { %1909 = vrsqrt.f32 %v2527_v5  ;;  %v421_v57 = vmul.f32 %v402_v50, %v2310_v11  ;;  %v470_v23 = vmax.f32 %v454_v58, 0.0  ;;  %v725_v33 = vmax.f32 %v709_v9, 0.0 }
 0x17b   :  { %1911 = vrsqrt.f32 %v2525_v35  ;;  %v335_v32 = vpop.xlane.xlu1 %334  ;;  %v600_v19 = vmul.f32 %v2497_v21, %v599_v2  ;;  %v726_v54 = vmax.f32 %v710_v60, 0.0  ;;  %v406_v50 = vpop.xlane.xlu0 %405  ;;  %v692_v31 = vmul.f32 %v2344_v20, %v673_v34 }
 0x17c   :  { %v453_v52 = vsub.f32 %v421_v57, %v437_v29  ;;  %v2580_v46 = vadd.f32 1e-05, %v470_v23  ;;  %v2583_v22 = vmul.f32 %v2310_v11, %v335_v32  ;;  %v423_v45 = vmul.f32 %v406_v50, %v2310_v11 }
 0x17d   :  { %v604_v44 = vsel %vm2565_vm14, %v2497_v21, %v600_v19  ;;  %v738_v24 = vpack.c.bf16 %v726_v54, %v725_v33  ;;  %vm621_vm1 = vweird.f32 %v2527_v5  ;;  %v711_v9 = vadd.f32 %v2362_v37, %v692_v31 }
 0x17e   :  { %v469_v15 = vmax.f32 %v453_v52, 0.0  ;;  %v674_v21 = vmul.f32 %v604_v44, %v482_v26  ;;  %v439_v43 = vmul.f32 %v2583_v22, %v2583_v22  ;;  %v484_v23 = vsub.f32 %v2272_v49, %v2481_v42 }
 0x17f   :  { %v727_v30 = vmax.f32 %v711_v9, 0.0  ;;  %vm641_vm7 = vweird.f32 %v2580_v46  ;;  %v487_v9 = vsub.f32 %v2297_v59, %v2583_v22 }
 0x180   :  { %v2545_v6 = vpop.eup %1909  ;;  %v2569_v36 = vadd.f32 1e-05, %v469_v15  ;;  %v693_v62 = vmul.f32 %v2344_v20, %v674_v21  ;;  %v455_v1 = vsub.f32 %v423_v45, %v439_v43  ;;  %v486_v45 = vsub.f32 %v2289_v55, %v2530_v48 }
 0x181   :  { %v2548_v12 = vpop.eup %1911  ;;  %v616_v18 = vmul.f32 %v2545_v6, %v2527_v5  ;;  %v337_v14 = vpop.xlane.xlu2 %336  ;;  %vm622_vm2 = vweird.f32 %v2545_v6 }
 0x182   :  { %v606_v17 = vmul.f32 %v2548_v12, %v2525_v35  ;;  %v2572_v13 = vmul.f32 %v2310_v11, %v337_v14  ;;  %1913 = vrsqrt.f32 %v2569_v36  ;;  %vm612_vm0 = vweird.f32 %v2548_v12  ;;  %vm623_vm4 = vmor %vm621_vm1, %vm622_vm2 }
 0x183   :  { %v617_v40 = vmul.f32 %v2545_v6, %v616_v18  ;;  %v408_v56 = vpop.xlane.xlu1 %407  ;;  %1915 = vrsqrt.f32 %v2580_v46  ;;  %v712_v2 = vadd.f32 %v2362_v37, %v693_v62  ;;  %v471_v8 = vmax.f32 %v455_v1, 0.0  ;;  %vm2615_vm3 = vmor %vm611_vm15, %vm612_vm0 }
 0x184   :  { %v607_v7 = vmul.f32 %v2548_v12, %v606_v17  ;;  %v440_v47 = vmul.f32 %v2572_v13, %v2572_v13  ;;  %v424_v3 = vmul.f32 %v408_v56, %v2310_v11  ;;  %vm631_vm5 = vweird.f32 %v2569_v36 }
 0x185   :  { %v618_v29 = vmul.f32 0.5, %v617_v40  ;;  %v728_v5 = vmax.f32 %v712_v2, 0.0  ;;  %v503_v28 = vadd.f32 1e-05, %v471_v8 }
 0x186   :  { %v608_v10 = vmul.f32 0.5, %v607_v7  ;;  %v456_v57 = vsub.f32 %v424_v3, %v440_v47 }
 0x187   :  { %v619_v0 = vsub.f32 1.5, %v618_v29  ;;  %v739_v40 = vpack.c.bf16 %v728_v5, %v727_v30  ;;  %v485_v29 = vsub.f32 %v2282_v53, %v2523_v41  ;;  %vm651_vm13 = vweird.f32 %v503_v28 }
 0x188   :  { %v2600_v39 = vpop.eup %1913  ;;  %v609_v32 = vsub.f32 1.5, %v608_v10  ;;  %v472_v52 = vmax.f32 %v456_v57, 0.0 }
 0x189   :  { %830 = vmatmul.bf16.gmra.mxu1 %v738_v24  ;;  %v2603_v61 = vpop.eup %1915  ;;  %v620_v4 = vmul.f32 %v2545_v6, %v619_v0  ;;  %v626_v58 = vmul.f32 %v2600_v39, %v2569_v36  ;;  %vm632_vm6 = vweird.f32 %v2600_v39 }
 0x18a   :  { %v610_v15 = vmul.f32 %v2548_v12, %v609_v32  ;;  %v636_v19 = vmul.f32 %v2603_v61, %v2580_v46  ;;  %v504_v18 = vadd.f32 1e-05, %v472_v52  ;;  %vm642_vm8 = vweird.f32 %v2603_v61  ;;  %vm633_vm9 = vmor %vm631_vm5, %vm632_vm6 }
 0x18b   :  { %v627_v14 = vmul.f32 %v2600_v39, %v626_v58  ;;  %v624_v60 = vsel %vm623_vm4, %v2545_v6, %v620_v4  ;;  %vm643_vm10 = vmor %vm641_vm7, %vm642_vm8  ;;  %v488_v4 = vsub.f32 %v2305_v63, %v2572_v13 }
 0x18c   :  { %v637_v17 = vmul.f32 %v2603_v61, %v636_v19  ;;  %v614_v33 = vsel %vm2615_vm3, %v2548_v12, %v610_v15  ;;  %1917 = vrsqrt.f32 %v504_v18  ;;  %v676_v56 = vmul.f32 %v624_v60, %v484_v23 }
 0x18d   :  { %v628_v54 = vmul.f32 0.5, %v627_v14  ;;  %1919 = vrsqrt.f32 %v503_v28  ;;  %v675_v6 = vmul.f32 %v614_v33, %v483_v38  ;;  %vm661_vm11 = vweird.f32 %v504_v18 }
 0x18e   :  { %v638_v44 = vmul.f32 0.5, %v637_v17  ;;  %v695_v49 = vmul.f32 %v2344_v20, %v676_v56 }
 0x18f   :  { %v629_v42 = vsub.f32 1.5, %v628_v54  ;;  %v694_v25 = vmul.f32 %v2344_v20, %v675_v6 }
 0x190   :  { %v639_v27 = vsub.f32 1.5, %v638_v44  ;;  %v714_v16 = vadd.f32 %v2362_v37, %v695_v49 }
 0x191   :  { %v630_v12 = vmul.f32 %v2600_v39, %v629_v42  ;;  %v713_v50 = vadd.f32 %v2362_v37, %v694_v25 }
 0x192   :  { %v1918_v26 = vpop.eup %1917  ;;  %v640_v24 = vmul.f32 %v2603_v61, %v639_v27  ;;  %v730_v36 = vmax.f32 %v714_v16, 0.0 }
 0x193   :  { %v1920_v51 = vpop.eup %1919  ;;  %v656_v7 = vmul.f32 %v1918_v26, %v504_v18  ;;  %v634_v21 = vsel %vm633_vm9, %v2600_v39, %v630_v12  ;;  %v729_v46 = vmax.f32 %v713_v50, 0.0  ;;  %vm662_vm12 = vweird.f32 %v1918_v26 }
 0x194   :  { %v646_v47 = vmul.f32 %v1920_v51, %v503_v28  ;;  %v644_v43 = vsel %vm643_vm10, %v2603_v61, %v640_v24  ;;  %v677_v57 = vmul.f32 %v634_v21, %v485_v29  ;;  %vm652_vm14 = vweird.f32 %v1920_v51  ;;  %vm663_vm15 = vmor %vm661_vm11, %vm662_vm12  ;;  %v1953_v24 = vld [vmem:[#allocation2] sm:$0xff]  ;;  %v1958_v29 = vld [vmem:[#allocation2 + $0x28] sm:$0xff] }
 0x195   :  { %v657_v3 = vmul.f32 %v1918_v26, %v656_v7  ;;  %v740_v10 = vpack.c.bf16 %v730_v36, %v729_v46  ;;  %v678_v0 = vmul.f32 %v644_v43, %v486_v45  ;;  %vm653_vm0 = vmor %vm651_vm13, %vm652_vm14  ;;  %v1955_v36 = vld [vmem:[#allocation2 + $0x10] sm:$0xff]  ;;  %v1957_v21 = vld [vmem:[#allocation2 + $0x20] sm:$0xff] }
 0x196   :  { %v647_v34 = vmul.f32 %v1920_v51, %v646_v47  ;;  %v696_v31 = vmul.f32 %v2344_v20, %v677_v57  ;;  %v1954_v47 = vld [vmem:[#allocation2 + $0x8] sm:$0xff]  ;;  %v1959_v46 = vld [vmem:[#allocation2 + $0x30] sm:$0xff]  ;;  %v2662_v43 = vld [vmem:[%s2945_s6] ss:$0 sm:$0xff] }
 0x197   :  { %v658_v62 = vmul.f32 0.5, %v657_v3  ;;  %v697_v39 = vmul.f32 %v2344_v20, %v678_v0  ;;  %v1956_v3 = vld [vmem:[#allocation2 + $0x18] sm:$0xff] }
 0x198   :  { %v648_v1 = vmul.f32 0.5, %v647_v34  ;;  %v715_v53 = vadd.f32 %v2362_v37, %v696_v31  ;;  %v1960_v34 = vld [vmem:[#allocation2 + $0x38] sm:$0xff] }
 0x199   :  { %835 = vmatmul.bf16.gmra.mxu1 %v739_v40  ;;  %v659_v32 = vsub.f32 1.5, %v658_v62  ;;  %v716_v55 = vadd.f32 %v2362_v37, %v697_v39 }
 0x19a   :  { %v649_v52 = vsub.f32 1.5, %v648_v1  ;;  %v731_v61 = vmax.f32 %v715_v53, 0.0 }
 0x19b   :  { %v660_v41 = vmul.f32 %v1918_v26, %v659_v32  ;;  %v732_v58 = vmax.f32 %v716_v55, 0.0 }
 0x19c   :  { %v650_v48 = vmul.f32 %v1920_v51, %v649_v52 }
 0x19d   :  { %v664_v2 = vsel %vm663_vm15, %v1918_v26, %v660_v41  ;;  %v741_v15 = vpack.c.bf16 %v732_v58, %v731_v61 }
 0x19e   :  { %v654_v8 = vsel %vm653_vm0, %v1920_v51, %v650_v48  ;;  %v680_v35 = vmul.f32 %v664_v2, %v488_v4 }
 0x19f   :  { %v679_v19 = vmul.f32 %v654_v8, %v487_v9 }
 0x1a0   :  { %v699_v18 = vmul.f32 %v2344_v20, %v680_v35 }
 0x1a1   :  { %v698_v5 = vmul.f32 %v2344_v20, %v679_v19 }
 0x1a2   :  { %v718_v14 = vadd.f32 %v2362_v37, %v699_v18 }
 0x1a3   :  { %v717_v60 = vadd.f32 %v2362_v37, %v698_v5 }
 0x1a4   :  { %v734_v23 = vmax.f32 %v718_v14, 0.0 }
 0x1a5   :  { %v733_v28 = vmax.f32 %v717_v60, 0.0 }
 0x1a7   :  { %v742_v63 = vpack.c.bf16 %v734_v23, %v733_v28 }
 0x1a9   :  { %840 = vmatmul.bf16.gmra.mxu1 %v740_v10 }
 0x1b9   :  { %845 = vmatmul.bf16.gmra.mxu1 %v741_v15 }
 0x1c9   :  { %850 = vmatmul.bf16.gmra.mxu1 %v742_v63 }
 0x1d6   :  { %v816_v13 = vpop.f32.mrf.mxu1 }
 0x1de   :  { %v818_v30 = vpop.f32.mrf.mxu1 }
 0x1df   :  { %v856_v17 = vpack.c.bf16 %v818_v30, %v816_v13 }
 0x1e6   :  { %v821_v59 = vpop.f32.mrf.mxu1 }
 0x1ee   :  { %v823_v22 = vpop.f32.mrf.mxu1 }
 0x1ef   :  { %v857_v33 = vpack.c.bf16 %v823_v22, %v821_v59 }
 0x1f6   :  { %v826_v38 = vpop.f32.mrf.mxu1 }
 0x1fe   :  { %v828_v40 = vpop.f32.mrf.mxu1 }
 0x1ff   :  { %v858_v56 = vpack.c.bf16 %v828_v40, %v826_v38 }
 0x206   :  { %v831_v54 = vpop.f32.mrf.mxu1 }
 0x20e   :  { %v833_v6 = vpop.f32.mrf.mxu1 }
 0x20f   :  { %v859_v20 = vpack.c.bf16 %v833_v6, %v831_v54 }
 0x216   :  { %v836_v44 = vpop.f32.mrf.mxu1 }
 0x21e   :  { %v838_v49 = vpop.f32.mrf.mxu1 }
 0x21f   :  { %v860_v50 = vpack.c.bf16 %v838_v49, %v836_v44  ;;  %v1834_v49 = vld [vmem:[#allocation8 + $0x30] sm:$0xff] }
 0x226   :  { %v841_v42 = vpop.f32.mrf.mxu1 }
 0x22e   :  { %v843_v37 = vpop.f32.mrf.mxu1 }
 0x22f   :  { %v861_v7 = vpack.c.bf16 %v843_v37, %v841_v42 }
 0x236   :  { %v846_v26 = vpop.f32.mrf.mxu1 }
 0x23e   :  { %v848_v25 = vpop.f32.mrf.mxu1 }
 0x23f   :  { %v862_v12 = vpack.c.bf16 %v848_v25, %v846_v26  ;;  %v1833_v26 = vld [vmem:[#allocation8 + $0x28] sm:$0xff] }
 0x246   :  { %v851_v27 = vpop.f32.mrf.mxu1 }
 0x24e   :  { %v853_v51 = vpop.f32.mrf.mxu1 }
 0x24f   :  { %v863_v16 = vpack.c.bf16 %v853_v51, %v851_v27  ;;  %v1832_v27 = vld [vmem:[#allocation8 + $0x20] sm:$0xff] }
 0x251   :  { %868 = vmatpush.bf16.msrb.mxu2 %v863_v16 }
 0x255   :  { %869 = vmatpush.bf16.msrb.mxu2 %v862_v12 }
 0x259   :  { %870 = vmatpush.bf16.msrb.mxu2 %v861_v7 }
 0x25d   :  { %871 = vmatpush.bf16.msrb.mxu2 %v860_v50 }
 0x261   :  { %872 = vmatpush.bf16.msrb.mxu2 %v859_v20  ;;  %v1835_v20 = vld [vmem:[#allocation8 + $0x38] sm:$0xff] }
 0x262   :  { %1417 = vmatpush.bf16.msrb.mxu3 %v1835_v20 }
 0x265   :  { %873 = vmatpush.bf16.msrb.mxu2 %v858_v56 }
 0x266   :  { %1418 = vmatpush.bf16.msrb.mxu3 %v1834_v49 }
 0x269   :  { %874 = vmatpush.bf16.msrb.mxu2 %v857_v33 }
 0x26a   :  { %1419 = vmatpush.bf16.msrb.mxu3 %v1833_v26 }
 0x26d   :  { %875 = vmatpush.bf16.msrb.mxu2 %v856_v17 }
 0x26e   :  { %1420 = vmatpush.bf16.msrb.mxu3 %v1832_v27 }
 0x270   :  { %876 = vmatmul.bf16.vlgmr.msrb.gmra.mxu2 %v1953_v24 }
 0x280   :  { %881 = vmatmul.bf16.gmra.mxu2 %v1954_v47 }
 0x290   :  { %886 = vmatmul.bf16.gmra.mxu2 %v1955_v36  ;;  %v1831_v36 = vld [vmem:[#allocation8 + $0x18] sm:$0xff] }
 0x291   :  { %1421 = vmatpush.bf16.msrb.mxu3 %v1831_v36 }
 0x2a0   :  { %891 = vmatmul.bf16.gmra.mxu2 %v1956_v3 }
 0x2b0   :  { %896 = vmatmul.bf16.gmra.mxu2 %v1957_v21 }
 0x2c0   :  { %901 = vmatmul.bf16.gmra.mxu2 %v1958_v29 }
 0x2d0   :  { %906 = vmatmul.bf16.gmra.mxu2 %v1959_v46  ;;  %v1830_v46 = vld [vmem:[#allocation8 + $0x10] sm:$0xff] }
 0x2d1   :  { %1422 = vmatpush.bf16.msrb.mxu3 %v1830_v46 }
 0x2e0   :  { %911 = vmatmul.bf16.gmra.mxu2 %v1960_v34 }
 0x2f3   :  { %v877_v45 = vpop.f32.mrf.mxu2 }
 0x2f4   :  { %v2665_v10 = vadd.f32 %v2662_v43, %v877_v45 }
 0x2f6   :  { %919 = vadd.xlane.f32.xlu2 %v2665_v10  ;;  %v967_v57 = vmul.f32 %v2665_v10, %v2665_v10 }
 0x2f8   :  { %983 = vadd.xlane.f32.xlu1 %v967_v57 }
 0x2fb   :  { %v879_v62 = vpop.f32.mrf.mxu2 }
 0x2fc   :  { %v2671_v0 = vadd.f32 %v2662_v43, %v879_v62 }
 0x2fe   :  { %921 = vadd.xlane.f32.xlu0 %v2671_v0  ;;  %v968_v1 = vmul.f32 %v2671_v0, %v2671_v0 }
 0x300   :  { %985 = vadd.xlane.f32.xlu2 %v968_v1  ;;  %v1829_v1 = vld [vmem:[#allocation8 + $0x8] sm:$0xff] }
 0x301   :  { %1423 = vmatpush.bf16.msrb.mxu3 %v1829_v1 }
 0x303   :  { %v882_v31 = vpop.f32.mrf.mxu2 }
 0x304   :  { %v2677_v32 = vadd.f32 %v2662_v43, %v882_v31 }
 0x306   :  { %923 = vadd.xlane.f32.xlu0 %v2677_v32  ;;  %v969_v39 = vmul.f32 %v2677_v32, %v2677_v32 }
 0x308   :  { %987 = vadd.xlane.f32.xlu2 %v969_v39 }
 0x30b   :  { %v884_v52 = vpop.f32.mrf.mxu2 }
 0x30c   :  { %v2683_v53 = vadd.f32 %v2662_v43, %v884_v52  ;;  %v1828_v52 = vld [vmem:[#allocation8] sm:$0xff] }
 0x30d   :  { %1424 = vmatpush.bf16.msrb.mxu3 %v1828_v52 }
 0x30e   :  { %925 = vadd.xlane.f32.xlu1 %v2683_v53  ;;  %v970_v41 = vmul.f32 %v2683_v53, %v2683_v53 }
 0x310   :  { %989 = vadd.xlane.f32.xlu0 %v970_v41 }
 0x313   :  { %v887_v55 = vpop.f32.mrf.mxu2 }
 0x314   :  { %v2689_v48 = vadd.f32 %v2662_v43, %v887_v55 }
 0x316   :  { %927 = vadd.xlane.f32.xlu1 %v2689_v48  ;;  %v971_v61 = vmul.f32 %v2689_v48, %v2689_v48 }
 0x318   :  { %991 = vadd.xlane.f32.xlu0 %v971_v61 }
 0x31b   :  { %v889_v2 = vpop.f32.mrf.mxu2 }
 0x31c   :  { %v2695_v4 = vadd.f32 %v2662_v43, %v889_v2 }
 0x31e   :  { %929 = vadd.xlane.f32.xlu2 %v2695_v4  ;;  %v972_v58 = vmul.f32 %v2695_v4, %v2695_v4 }
 0x320   :  { %993 = vadd.xlane.f32.xlu1 %v972_v58 }
 0x323   :  { %v892_v8 = vpop.f32.mrf.mxu2 }
 0x324   :  { %v2701_v9 = vadd.f32 %v2662_v43, %v892_v8 }
 0x326   :  { %931 = vadd.xlane.f32.xlu2 %v2701_v9  ;;  %v973_v15 = vmul.f32 %v2701_v9, %v2701_v9 }
 0x328   :  { %995 = vadd.xlane.f32.xlu1 %v973_v15 }
 0x32b   :  { %v894_v35 = vpop.f32.mrf.mxu2 }
 0x32c   :  { %v2707_v19 = vadd.f32 %v2662_v43, %v894_v35 }
 0x32e   :  { %933 = vadd.xlane.f32.xlu0 %v2707_v19  ;;  %v974_v18 = vmul.f32 %v2707_v19, %v2707_v19 }
 0x330   :  { %997 = vadd.xlane.f32.xlu2 %v974_v18 }
 0x333   :  { %v897_v5 = vpop.f32.mrf.mxu2 }
 0x334   :  { %v2713_v14 = vadd.f32 %v2662_v43, %v897_v5 }
 0x336   :  { %935 = vadd.xlane.f32.xlu0 %v2713_v14  ;;  %v975_v60 = vmul.f32 %v2713_v14, %v2713_v14 }
 0x338   :  { %999 = vadd.xlane.f32.xlu2 %v975_v60 }
 0x33b   :  { %v899_v23 = vpop.f32.mrf.mxu2 }
 0x33c   :  { %v2719_v28 = vadd.f32 %v2662_v43, %v899_v23 }
 0x33e   :  { %937 = vadd.xlane.f32.xlu1 %v2719_v28  ;;  %v976_v63 = vmul.f32 %v2719_v28, %v2719_v28 }
 0x340   :  { %1001 = vadd.xlane.f32.xlu0 %v976_v63 }
 0x343   :  { %v902_v13 = vpop.f32.mrf.mxu2 }
 0x344   :  { %v2725_v30 = vadd.f32 %v2662_v43, %v902_v13 }
 0x346   :  { %939 = vadd.xlane.f32.xlu1 %v2725_v30  ;;  %v977_v17 = vmul.f32 %v2725_v30, %v2725_v30 }
 0x348   :  { %1003 = vadd.xlane.f32.xlu0 %v977_v17 }
 0x34b   :  { %v904_v59 = vpop.f32.mrf.mxu2 }
 0x34c   :  { %v2731_v22 = vadd.f32 %v2662_v43, %v904_v59 }
 0x34e   :  { %941 = vadd.xlane.f32.xlu2 %v2731_v22  ;;  %v978_v33 = vmul.f32 %v2731_v22, %v2731_v22 }
 0x350   :  { %1005 = vadd.xlane.f32.xlu1 %v978_v33 }
 0x353   :  { %v907_v38 = vpop.f32.mrf.mxu2 }
 0x354   :  { %v2737_v40 = vadd.f32 %v2662_v43, %v907_v38 }
 0x356   :  { %943 = vadd.xlane.f32.xlu2 %v2737_v40  ;;  %v979_v56 = vmul.f32 %v2737_v40, %v2737_v40 }
 0x358   :  { %1007 = vadd.xlane.f32.xlu1 %v979_v56 }
 0x35b   :  { %v909_v54 = vpop.f32.mrf.mxu2 }
 0x35c   :  { %v2743_v6 = vadd.f32 %v2662_v43, %v909_v54 }
 0x35e   :  { %945 = vadd.xlane.f32.xlu0 %v2743_v6  ;;  %v980_v44 = vmul.f32 %v2743_v6, %v2743_v6 }
 0x360   :  { %1009 = vadd.xlane.f32.xlu2 %v980_v44 }
 0x363   :  { %v912_v42 = vpop.f32.mrf.mxu2 }
 0x364   :  { %v2749_v37 = vadd.f32 %v2662_v43, %v912_v42 }
 0x366   :  { %947 = vadd.xlane.f32.xlu0 %v2749_v37  ;;  %v981_v25 = vmul.f32 %v2749_v37, %v2749_v37 }
 0x368   :  { %1011 = vadd.xlane.f32.xlu2 %v981_v25 }
 0x369   :  { %v920_v51 = vpop.xlane.xlu2 %919 }
 0x36a   :  { %v2755_v16 = vmul.f32 %v920_v51, %v2310_v11 }
 0x36b   :  { %v914_v12 = vpop.f32.mrf.mxu2  ;;  %v984_v7 = vpop.xlane.xlu1 %983 }
 0x36c   :  { %v1031_v50 = vmul.f32 %v2755_v16, %v2755_v16  ;;  %v2760_v24 = vadd.f32 %v2662_v43, %v914_v12  ;;  %v1015_v47 = vmul.f32 %v984_v7, %v2310_v11  ;;  %v1079_v25 = vsub.f32 %v2665_v10, %v2755_v16 }
 0x36e   :  { %v1047_v3 = vsub.f32 %v1015_v47, %v1031_v50  ;;  %949 = vadd.xlane.f32.xlu1 %v2760_v24  ;;  %v982_v21 = vmul.f32 %v2760_v24, %v2760_v24  ;;  %v2789_v47 = vld [vmem:[%s2946_s7] ss:$0 sm:$0xff] }
 0x370   :  { %v1063_v29 = vmax.f32 %v1047_v3, 0.0  ;;  %1013 = vadd.xlane.f32.xlu0 %v982_v21 }
 0x371   :  { %v922_v34 = vpop.xlane.xlu0 %921 }
 0x372   :  { %v1095_v45 = vadd.f32 1e-05, %v1063_v29  ;;  %v2767_v57 = vmul.f32 %v922_v34, %v2310_v11 }
 0x373   :  { %v986_v43 = vpop.xlane.xlu2 %985 }
 0x374   :  { %1921 = vrsqrt.f32 %v1095_v45  ;;  %v1032_v62 = vmul.f32 %v2767_v57, %v2767_v57  ;;  %v1016_v31 = vmul.f32 %v986_v43, %v2310_v11  ;;  %vm1117_vm2 = vweird.f32 %v1095_v45 }
 0x375   :  { %v1080_v43 = vsub.f32 %v2671_v0, %v2767_v57 }
 0x376   :  { %v1048_v39 = vsub.f32 %v1016_v31, %v1032_v62  ;;  %v2803_v31 = vld [vmem:[%s2947_s8] ss:$0 sm:$0xff] }
 0x378   :  { %v1064_v41 = vmax.f32 %v1048_v39, 0.0 }
 0x379   :  { %v924_v55 = vpop.xlane.xlu0 %923 }
 0x37a   :  { %v1922_v61 = vpop.eup %1921  ;;  %v2773_v2 = vmul.f32 %v924_v55, %v2310_v11  ;;  %v1096_v8 = vadd.f32 1e-05, %v1064_v41 }
 0x37b   :  { %v1112_v58 = vmul.f32 %v1922_v61, %v1095_v45  ;;  %v988_v15 = vpop.xlane.xlu2 %987  ;;  %vm1118_vm1 = vweird.f32 %v1922_v61 }
 0x37c   :  { %v1033_v35 = vmul.f32 %v2773_v2, %v2773_v2  ;;  %v1017_v18 = vmul.f32 %v988_v15, %v2310_v11  ;;  %1923 = vrsqrt.f32 %v1096_v8  ;;  %vm1119_vm3 = vmor %vm1117_vm2, %vm1118_vm1  ;;  %vm1127_vm5 = vweird.f32 %v1096_v8 }
 0x37d   :  { %v1113_v5 = vmul.f32 %v1922_v61, %v1112_v58 }
 0x37e   :  { %v1049_v60 = vsub.f32 %v1017_v18, %v1033_v35 }
 0x37f   :  { %v1114_v23 = vmul.f32 0.5, %v1113_v5 }
 0x380   :  { %v1065_v63 = vmax.f32 %v1049_v60, 0.0 }
 0x381   :  { %v1115_v13 = vsub.f32 1.5, %v1114_v23  ;;  %v926_v17 = vpop.xlane.xlu1 %925 }
 0x382   :  { %v1097_v59 = vadd.f32 1e-05, %v1065_v63  ;;  %v2779_v33 = vmul.f32 %v926_v17, %v2310_v11  ;;  %v1924_v38 = vpop.eup %1923 }
 0x383   :  { %v1116_v56 = vmul.f32 %v1922_v61, %v1115_v13  ;;  %v990_v54 = vpop.xlane.xlu0 %989  ;;  %v1122_v20 = vmul.f32 %v1924_v38, %v1096_v8  ;;  %vm1128_vm4 = vweird.f32 %v1924_v38 }
 0x384   :  { %1925 = vrsqrt.f32 %v1097_v59  ;;  %v1034_v44 = vmul.f32 %v2779_v33, %v2779_v33  ;;  %v1018_v49 = vmul.f32 %v990_v54, %v2310_v11  ;;  %vm1129_vm6 = vmor %vm1127_vm5, %vm1128_vm4  ;;  %vm1137_vm8 = vweird.f32 %v1097_v59 }
 0x385   :  { %v1120_v42 = vsel %vm1119_vm3, %v1922_v61, %v1116_v56  ;;  %v1123_v26 = vmul.f32 %v1924_v38, %v1122_v20 }
 0x386   :  { %v1050_v27 = vsub.f32 %v1018_v49, %v1034_v44  ;;  %v1271_v50 = vmul.f32 %v1120_v42, %v1079_v25  ;;  %v1081_v44 = vsub.f32 %v2677_v32, %v2773_v2 }
 0x387   :  { %v1124_v51 = vmul.f32 0.5, %v1123_v26 }
 0x388   :  { %v1066_v12 = vmax.f32 %v1050_v27, 0.0  ;;  %v1290_v1 = vmul.f32 %v2789_v47, %v1271_v50 }
 0x389   :  { %v928_v7 = vpop.xlane.xlu1 %927  ;;  %v1125_v3 = vsub.f32 1.5, %v1124_v51 }
 0x38a   :  { %v1926_v36 = vpop.eup %1925  ;;  %v2792_v21 = vmul.f32 %v928_v7, %v2310_v11  ;;  %v1098_v46 = vadd.f32 1e-05, %v1066_v12  ;;  %v1309_v0 = vadd.f32 %v2803_v31, %v1290_v1 }
 0x38b   :  { %v1132_v29 = vmul.f32 %v1926_v36, %v1097_v59  ;;  %v992_v34 = vpop.xlane.xlu0 %991  ;;  %v1126_v10 = vmul.f32 %v1924_v38, %v1125_v3  ;;  %vm1138_vm7 = vweird.f32 %v1926_v36 }
 0x38c   :  { %v1035_v16 = vmul.f32 %v2792_v21, %v2792_v21  ;;  %v1019_v45 = vmul.f32 %v992_v34, %v2310_v11  ;;  %1927 = vrsqrt.f32 %v1098_v46  ;;  %vm1139_vm9 = vmor %vm1137_vm8, %vm1138_vm7  ;;  %vm1147_vm11 = vweird.f32 %v1098_v46 }
 0x38d   :  { %v1133_v62 = vmul.f32 %v1926_v36, %v1132_v29  ;;  %v1130_v39 = vsel %vm1129_vm6, %v1924_v38, %v1126_v10  ;;  %v1325_v38 = vmax.f32 %v1309_v0, 0.0  ;;  %v1082_v34 = vsub.f32 %v2683_v53, %v2779_v33 }
 0x38e   :  { %v1051_v52 = vsub.f32 %v1019_v45, %v1035_v16  ;;  %v1272_v55 = vmul.f32 %v1130_v39, %v1080_v43 }
 0x38f   :  { %v1134_v41 = vmul.f32 0.5, %v1133_v62 }
 0x390   :  { %v1067_v61 = vmax.f32 %v1051_v52, 0.0  ;;  %v1291_v15 = vmul.f32 %v2789_v47, %v1272_v55 }
 0x391   :  { %v1135_v58 = vsub.f32 1.5, %v1134_v41  ;;  %v930_v8 = vpop.xlane.xlu2 %929 }
 0x392   :  { %v1099_v57 = vadd.f32 1e-05, %v1067_v61  ;;  %v2808_v35 = vmul.f32 %v930_v8, %v2310_v11  ;;  %v1928_v18 = vpop.eup %1927  ;;  %v1310_v23 = vadd.f32 %v2803_v31, %v1291_v15 }
 0x393   :  { %v1136_v5 = vmul.f32 %v1926_v36, %v1135_v58  ;;  %v994_v60 = vpop.xlane.xlu1 %993  ;;  %v1142_v63 = vmul.f32 %v1928_v18, %v1098_v46  ;;  %vm1148_vm10 = vweird.f32 %v1928_v18 }
 0x394   :  { %1929 = vrsqrt.f32 %v1099_v57  ;;  %v1036_v13 = vmul.f32 %v2808_v35, %v2808_v35  ;;  %v1020_v17 = vmul.f32 %v994_v60, %v2310_v11  ;;  %v1326_v56 = vmax.f32 %v1310_v23, 0.0  ;;  %vm1149_vm12 = vmor %vm1147_vm11, %vm1148_vm10 }
 0x395   :  { %v1143_v54 = vmul.f32 %v1928_v18, %v1142_v63  ;;  %v1140_v20 = vsel %vm1139_vm9, %v1926_v36, %v1136_v5  ;;  %vm1157_vm14 = vweird.f32 %v1099_v57 }
 0x396   :  { %v1052_v49 = vsub.f32 %v1020_v17, %v1036_v13  ;;  %v1341_v42 = vpack.c.bf16 %v1326_v56, %v1325_v38  ;;  %v1273_v27 = vmul.f32 %v1140_v20, %v1081_v44  ;;  %v1083_v17 = vsub.f32 %v2689_v48, %v2792_v21 }
 0x397   :  { %v1144_v26 = vmul.f32 0.5, %v1143_v54 }
 0x398   :  { %v1068_v25 = vmax.f32 %v1052_v49, 0.0  ;;  %1425 = vmatmul.bf16.vlgmr.msrb.gmra.mxu3 %v1341_v42  ;;  %v1292_v16 = vmul.f32 %v2789_v47, %v1273_v27 }
 0x399   :  { %v932_v59 = vpop.xlane.xlu2 %931  ;;  %v1145_v12 = vsub.f32 1.5, %v1144_v26 }
 0x39a   :  { %v1930_v51 = vpop.eup %1929  ;;  %v2817_v7 = vmul.f32 %v932_v59, %v2310_v11  ;;  %v1100_v3 = vadd.f32 1e-05, %v1068_v25  ;;  %v1311_v55 = vadd.f32 %v2803_v31, %v1292_v16 }
 0x39b   :  { %v1152_v50 = vmul.f32 %v1930_v51, %v1099_v57  ;;  %v996_v29 = vpop.xlane.xlu1 %995  ;;  %v1146_v36 = vmul.f32 %v1928_v18, %v1145_v12  ;;  %vm1158_vm13 = vweird.f32 %v1930_v51  ;;  %v1084_v12 = vsub.f32 %v2695_v4, %v2808_v35 }
 0x39c   :  { %v1037_v32 = vmul.f32 %v2817_v7, %v2817_v7  ;;  %v1021_v2 = vmul.f32 %v996_v29, %v2310_v11  ;;  %1931 = vrsqrt.f32 %v1100_v3  ;;  %vm1159_vm15 = vmor %vm1157_vm14, %vm1158_vm13  ;;  %v1327_v60 = vmax.f32 %v1311_v55, 0.0 }
 0x39d   :  { %v1153_v10 = vmul.f32 %v1930_v51, %v1152_v50  ;;  %v1150_v43 = vsel %vm1149_vm12, %v1928_v18, %v1146_v36  ;;  %vm1167_vm1 = vweird.f32 %v1100_v3 }
 0x39e   :  { %v1053_v45 = vsub.f32 %v1021_v2, %v1037_v32  ;;  %v1274_v1 = vmul.f32 %v1150_v43, %v1082_v34 }
 0x39f   :  { %v1154_v62 = vmul.f32 0.5, %v1153_v10 }
 0x3a0   :  { %v1069_v39 = vmax.f32 %v1053_v45, 0.0  ;;  %v1293_v41 = vmul.f32 %v2789_v47, %v1274_v1 }
 0x3a1   :  { %v1155_v52 = vsub.f32 1.5, %v1154_v62  ;;  %v934_v46 = vpop.xlane.xlu0 %933 }
 0x3a2   :  { %v1101_v61 = vadd.f32 1e-05, %v1069_v39  ;;  %v2828_v53 = vmul.f32 %v934_v46, %v2310_v11  ;;  %v1932_v33 = vpop.eup %1931  ;;  %v1312_v15 = vadd.f32 %v2803_v31, %v1293_v41 }
 0x3a3   :  { %v1156_v58 = vmul.f32 %v1930_v51, %v1155_v52  ;;  %v998_v8 = vpop.xlane.xlu2 %997  ;;  %v1162_v0 = vmul.f32 %v1932_v33, %v1100_v3  ;;  %vm1168_vm0 = vweird.f32 %v1932_v33 }
 0x3a4   :  { %1933 = vrsqrt.f32 %v1101_v61  ;;  %v1038_v18 = vmul.f32 %v2828_v53, %v2828_v53  ;;  %v1022_v5 = vmul.f32 %v998_v8, %v2310_v11  ;;  %v1328_v23 = vmax.f32 %v1312_v15, 0.0  ;;  %vm1169_vm2 = vmor %vm1167_vm1, %vm1168_vm0 }
 0x3a5   :  { %v1163_v63 = vmul.f32 %v1932_v33, %v1162_v0  ;;  %v1160_v13 = vsel %vm1159_vm15, %v1930_v51, %v1156_v58  ;;  %vm1177_vm4 = vweird.f32 %v1101_v61  ;;  %v1085_v0 = vsub.f32 %v2701_v9, %v2817_v7 }
 0x3a6   :  { %v1054_v38 = vsub.f32 %v1022_v5, %v1038_v18  ;;  %v1342_v56 = vpack.c.bf16 %v1328_v23, %v1327_v60  ;;  %v1275_v44 = vmul.f32 %v1160_v13, %v1083_v17 }
 0x3a7   :  { %v1164_v54 = vmul.f32 0.5, %v1163_v63 }
 0x3a8   :  { %v1070_v20 = vmax.f32 %v1054_v38, 0.0  ;;  %1430 = vmatmul.bf16.gmra.mxu3 %v1342_v56  ;;  %v1294_v29 = vmul.f32 %v2789_v47, %v1275_v44  ;;  %v1086_v44 = vsub.f32 %v2707_v19, %v2828_v53 }
 0x3a9   :  { %v936_v57 = vpop.xlane.xlu0 %935  ;;  %v1165_v42 = vsub.f32 1.5, %v1164_v54 }
 0x3aa   :  { %v1934_v49 = vpop.eup %1933  ;;  %v2837_v26 = vmul.f32 %v936_v57, %v2310_v11  ;;  %v1102_v59 = vadd.f32 1e-05, %v1070_v20  ;;  %v1313_v43 = vadd.f32 %v2803_v31, %v1294_v29 }
 0x3ab   :  { %v1172_v25 = vmul.f32 %v1934_v49, %v1101_v61  ;;  %v1000_v27 = vpop.xlane.xlu2 %999  ;;  %v1166_v51 = vmul.f32 %v1932_v33, %v1165_v42  ;;  %vm1178_vm3 = vweird.f32 %v1934_v49 }
 0x3ac   :  { %v1039_v48 = vmul.f32 %v2837_v26, %v2837_v26  ;;  %v1023_v21 = vmul.f32 %v1000_v27, %v2310_v11  ;;  %1935 = vrsqrt.f32 %v1102_v59  ;;  %vm1179_vm5 = vmor %vm1177_vm4, %vm1178_vm3  ;;  %vm1187_vm7 = vweird.f32 %v1102_v59 }
 0x3ad   :  { %v1173_v50 = vmul.f32 %v1934_v49, %v1172_v25  ;;  %v1170_v32 = vsel %vm1169_vm2, %v1932_v33, %v1166_v51  ;;  %v1329_v33 = vmax.f32 %v1313_v43, 0.0 }
 0x3ae   :  { %v1055_v36 = vsub.f32 %v1023_v21, %v1039_v48  ;;  %v1276_v34 = vmul.f32 %v1170_v32, %v1084_v12 }
 0x3af   :  { %v1174_v2 = vmul.f32 0.5, %v1173_v50 }
 0x3b0   :  { %v1071_v10 = vmax.f32 %v1055_v36, 0.0  ;;  %v1295_v45 = vmul.f32 %v2789_v47, %v1276_v34 }
 0x3b1   :  { %v1175_v16 = vsub.f32 1.5, %v1174_v2  ;;  %v938_v3 = vpop.xlane.xlu1 %937 }
 0x3b2   :  { %v1103_v62 = vadd.f32 1e-05, %v1071_v10  ;;  %v2848_v4 = vmul.f32 %v938_v3, %v2310_v11  ;;  %v1936_v35 = vpop.eup %1935  ;;  %v1314_v52 = vadd.f32 %v2803_v31, %v1295_v45 }
 0x3b3   :  { %v1176_v1 = vmul.f32 %v1934_v49, %v1175_v16  ;;  %v1002_v39 = vpop.xlane.xlu0 %1001  ;;  %v1182_v46 = vmul.f32 %v1936_v35, %v1102_v59  ;;  %vm1188_vm6 = vweird.f32 %v1936_v35 }
 0x3b4   :  { %1937 = vrsqrt.f32 %v1103_v62  ;;  %v1040_v41 = vmul.f32 %v2848_v4, %v2848_v4  ;;  %v1024_v55 = vmul.f32 %v1002_v39, %v2310_v11  ;;  %v1330_v58 = vmax.f32 %v1314_v52, 0.0  ;;  %vm1189_vm8 = vmor %vm1187_vm7, %vm1188_vm6 }
 0x3b5   :  { %v1183_v8 = vmul.f32 %v1936_v35, %v1182_v46  ;;  %v1180_v15 = vsel %vm1179_vm5, %v1934_v49, %v1176_v1  ;;  %vm1197_vm10 = vweird.f32 %v1103_v62  ;;  %v1087_v39 = vsub.f32 %v2713_v14, %v2837_v26 }
 0x3b6   :  { %v1056_v18 = vsub.f32 %v1024_v55, %v1040_v41  ;;  %v1343_v5 = vpack.c.bf16 %v1330_v58, %v1329_v33  ;;  %v1277_v63 = vmul.f32 %v1180_v15, %v1085_v0 }
 0x3b7   :  { %v1184_v60 = vmul.f32 0.5, %v1183_v8 }
 0x3b8   :  { %v1072_v23 = vmax.f32 %v1056_v18, 0.0  ;;  %1435 = vmatmul.bf16.gmra.mxu3 %v1343_v5  ;;  %v1296_v42 = vmul.f32 %v2789_v47, %v1277_v63 }
 0x3b9   :  { %v940_v61 = vpop.xlane.xlu1 %939  ;;  %v1185_v17 = vsub.f32 1.5, %v1184_v60 }
 0x3ba   :  { %v1938_v13 = vpop.eup %1937  ;;  %v2857_v38 = vmul.f32 %v940_v61, %v2310_v11  ;;  %v1104_v54 = vadd.f32 1e-05, %v1072_v23  ;;  %v1315_v29 = vadd.f32 %v2803_v31, %v1296_v42  ;;  %v1088_v23 = vsub.f32 %v2719_v28, %v2848_v4 }
 0x3bb   :  { %v1192_v56 = vmul.f32 %v1938_v13, %v1103_v62  ;;  %v1004_v20 = vpop.xlane.xlu0 %1003  ;;  %v1186_v57 = vmul.f32 %v1936_v35, %v1185_v17  ;;  %vm1198_vm9 = vweird.f32 %v1938_v13 }
 0x3bc   :  { %v1041_v9 = vmul.f32 %v2857_v38, %v2857_v38  ;;  %v1025_v7 = vmul.f32 %v1004_v20, %v2310_v11  ;;  %1939 = vrsqrt.f32 %v1104_v54  ;;  %vm1199_vm11 = vmor %vm1197_vm10, %vm1198_vm9  ;;  %v1331_v45 = vmax.f32 %v1315_v29, 0.0 }
 0x3bd   :  { %v1193_v49 = vmul.f32 %v1938_v13, %v1192_v56  ;;  %v1190_v27 = vsel %vm1189_vm8, %v1936_v35, %v1186_v57  ;;  %vm1207_vm13 = vweird.f32 %v1104_v54 }
 0x3be   :  { %v1057_v25 = vsub.f32 %v1025_v7, %v1041_v9  ;;  %v1278_v48 = vmul.f32 %v1190_v27, %v1086_v44 }
 0x3bf   :  { %v1194_v51 = vmul.f32 0.5, %v1193_v49 }
 0x3c0   :  { %v1073_v21 = vmax.f32 %v1057_v25, 0.0  ;;  %v1297_v50 = vmul.f32 %v2789_v47, %v1278_v48 }
 0x3c1   :  { %v1195_v12 = vsub.f32 1.5, %v1194_v51  ;;  %v942_v59 = vpop.xlane.xlu2 %941 }
 0x3c2   :  { %v1105_v36 = vadd.f32 1e-05, %v1073_v21  ;;  %v2868_v19 = vmul.f32 %v942_v59, %v2310_v11  ;;  %v1940_v53 = vpop.eup %1939  ;;  %v1316_v34 = vadd.f32 %v2803_v31, %v1297_v50 }
 0x3c3   :  { %v1196_v32 = vmul.f32 %v1938_v13, %v1195_v12  ;;  %v1006_v2 = vpop.xlane.xlu1 %1005  ;;  %v1202_v10 = vmul.f32 %v1940_v53, %v1104_v54  ;;  %vm1208_vm12 = vweird.f32 %v1940_v53 }
 0x3c4   :  { %1941 = vrsqrt.f32 %v1105_v36  ;;  %v1042_v16 = vmul.f32 %v2868_v19, %v2868_v19  ;;  %v1026_v3 = vmul.f32 %v1006_v2, %v2310_v11  ;;  %v1332_v43 = vmax.f32 %v1316_v34, 0.0  ;;  %vm1209_vm14 = vmor %vm1207_vm13, %vm1208_vm12 }
 0x3c5   :  { %v1203_v35 = vmul.f32 %v1940_v53, %v1202_v10  ;;  %v1200_v1 = vsel %vm1199_vm11, %v1938_v13, %v1196_v32  ;;  %vm1217_vm0 = vweird.f32 %v1105_v36 }
 0x3c6   :  { %v1058_v52 = vsub.f32 %v1026_v3, %v1042_v16  ;;  %v1344_v46 = vpack.c.bf16 %v1332_v43, %v1331_v45  ;;  %v1279_v33 = vmul.f32 %v1200_v1, %v1087_v39 }
 0x3c7   :  { %v1204_v41 = vmul.f32 0.5, %v1203_v35 }
 0x3c8   :  { %v1074_v55 = vmax.f32 %v1058_v52, 0.0  ;;  %1440 = vmatmul.bf16.gmra.mxu3 %v1344_v46  ;;  %v1298_v63 = vmul.f32 %v2789_v47, %v1279_v33  ;;  %v1090_v46 = vsub.f32 %v2731_v22, %v2868_v19 }
 0x3c9   :  { %v944_v62 = vpop.xlane.xlu2 %943  ;;  %v1205_v8 = vsub.f32 1.5, %v1204_v41 }
 0x3ca   :  { %v1942_v58 = vpop.eup %1941  ;;  %v2877_v15 = vmul.f32 %v944_v62, %v2310_v11  ;;  %v1106_v18 = vadd.f32 1e-05, %v1074_v55  ;;  %v1317_v44 = vadd.f32 %v2803_v31, %v1298_v63 }
 0x3cb   :  { %v1212_v0 = vmul.f32 %v1942_v58, %v1105_v36  ;;  %v1008_v5 = vpop.xlane.xlu1 %1007  ;;  %v1206_v60 = vmul.f32 %v1940_v53, %v1205_v8  ;;  %vm1218_vm15 = vweird.f32 %v1942_v58 }
 0x3cc   :  { %v1043_v14 = vmul.f32 %v2877_v15, %v2877_v15  ;;  %v1027_v26 = vmul.f32 %v1008_v5, %v2310_v11  ;;  %1943 = vrsqrt.f32 %v1106_v18  ;;  %vm1219_vm1 = vmor %vm1217_vm0, %vm1218_vm15  ;;  %v1333_v12 = vmax.f32 %v1317_v44, 0.0 }
 0x3cd   :  { %v1213_v61 = vmul.f32 %v1942_v58, %v1212_v0  ;;  %v1210_v17 = vsel %vm1209_vm14, %v1940_v53, %v1206_v60  ;;  %v1089_v53 = vsub.f32 %v2725_v30, %v2857_v38  ;;  %vm1227_vm3 = vweird.f32 %v1106_v18 }
 0x3ce   :  { %v1059_v13 = vsub.f32 %v1027_v26, %v1043_v14  ;;  %v1280_v20 = vmul.f32 %v1210_v17, %v1088_v23 }
 0x3cf   :  { %v1214_v56 = vmul.f32 0.5, %v1213_v61 }
 0x3d0   :  { %v1075_v57 = vmax.f32 %v1059_v13, 0.0  ;;  %v1299_v7 = vmul.f32 %v2789_v47, %v1280_v20 }
 0x3d1   :  { %v1215_v9 = vsub.f32 1.5, %v1214_v56  ;;  %v946_v54 = vpop.xlane.xlu0 %945 }
 0x3d2   :  { %v1107_v49 = vadd.f32 1e-05, %v1075_v57  ;;  %v2888_v28 = vmul.f32 %v946_v54, %v2310_v11  ;;  %v1944_v4 = vpop.eup %1943  ;;  %v1318_v27 = vadd.f32 %v2803_v31, %v1299_v7  ;;  %v1091_v7 = vsub.f32 %v2737_v40, %v2877_v15 }
 0x3d3   :  { %v1216_v42 = vmul.f32 %v1942_v58, %v1215_v9  ;;  %v1010_v25 = vpop.xlane.xlu2 %1009  ;;  %v1222_v51 = vmul.f32 %v1944_v4, %v1106_v18  ;;  %vm1228_vm2 = vweird.f32 %v1944_v4 }
 0x3d4   :  { %1945 = vrsqrt.f32 %v1107_v49  ;;  %v1044_v48 = vmul.f32 %v2888_v28, %v2888_v28  ;;  %v1028_v21 = vmul.f32 %v1010_v25, %v2310_v11  ;;  %v1334_v59 = vmax.f32 %v1318_v27, 0.0  ;;  %vm1229_vm4 = vmor %vm1227_vm3, %vm1228_vm2  ;;  %v1843_v27 = vld [vmem:[#allocation10 + $0x38] sm:$0xff] }
 0x3d5   :  { %v1223_v50 = vmul.f32 %v1944_v4, %v1222_v51  ;;  %v1220_v29 = vsel %vm1219_vm1, %v1942_v58, %v1216_v42  ;;  %vm1237_vm6 = vweird.f32 %v1107_v49  ;;  %1558 = vmatpush.bf16.msrb.mxu0 %v1843_v27 }
 0x3d6   :  { %v1060_v32 = vsub.f32 %v1028_v21, %v1044_v48  ;;  %v1345_v2 = vpack.c.bf16 %v1334_v59, %v1333_v12  ;;  %v1281_v16 = vmul.f32 %v1220_v29, %v1089_v53 }
 0x3d7   :  { %v1224_v34 = vmul.f32 0.5, %v1223_v50  ;;  %v1092_v50 = vsub.f32 %v2743_v6, %v2888_v28  ;;  %v1840_v28 = vld [vmem:[#allocation10 + $0x20] sm:$0xff] }
 0x3d8   :  { %v1076_v10 = vmax.f32 %v1060_v32, 0.0  ;;  %1445 = vmatmul.bf16.gmra.mxu3 %v1345_v2  ;;  %v1300_v55 = vmul.f32 %v2789_v47, %v1281_v16  ;;  %v1841_v2 = vld [vmem:[#allocation10 + $0x28] sm:$0xff] }
 0x3d9   :  { %v948_v36 = vpop.xlane.xlu0 %947  ;;  %v1225_v45 = vsub.f32 1.5, %v1224_v34 }
 0x3da   :  { %v1946_v3 = vpop.eup %1945  ;;  %v2897_v43 = vmul.f32 %v948_v36, %v2310_v11  ;;  %v1108_v1 = vadd.f32 1e-05, %v1076_v10  ;;  %v1319_v14 = vadd.f32 %v2803_v31, %v1300_v55 }
 0x3db   :  { %v1232_v35 = vmul.f32 %v1946_v3, %v1107_v49  ;;  %v1012_v39 = vpop.xlane.xlu2 %1011  ;;  %v1226_v52 = vmul.f32 %v1944_v4, %v1225_v45  ;;  %vm1238_vm5 = vweird.f32 %v1946_v3 }
 0x3dc   :  { %v1045_v30 = vmul.f32 %v2897_v43, %v2897_v43  ;;  %v1029_v38 = vmul.f32 %v1012_v39, %v2310_v11  ;;  %1947 = vrsqrt.f32 %v1108_v1  ;;  %vm1239_vm7 = vmor %vm1237_vm6, %vm1238_vm5  ;;  %v1335_v20 = vmax.f32 %v1319_v14, 0.0 }
 0x3dd   :  { %v1233_v41 = vmul.f32 %v1946_v3, %v1232_v35  ;;  %v1230_v33 = vsel %vm1229_vm4, %v1944_v4, %v1226_v52  ;;  %vm1247_vm9 = vweird.f32 %v1108_v1 }
 0x3de   :  { %v1061_v62 = vsub.f32 %v1029_v38, %v1045_v30  ;;  %v1282_v8 = vmul.f32 %v1230_v33, %v1090_v46  ;;  %v1093_v30 = vsub.f32 %v2749_v37, %v2897_v43  ;;  %v1838_v37 = vld [vmem:[#allocation10 + $0x10] sm:$0xff] }
 0x3df   :  { %v1234_v58 = vmul.f32 0.5, %v1233_v41 }
 0x3e0   :  { %v1077_v0 = vmax.f32 %v1061_v62, 0.0  ;;  %v1301_v60 = vmul.f32 %v2789_v47, %v1282_v8 }
 0x3e1   :  { %v1235_v5 = vsub.f32 1.5, %v1234_v58  ;;  %v950_v18 = vpop.xlane.xlu1 %949 }
 0x3e2   :  { %v1109_v26 = vadd.f32 1e-05, %v1077_v0  ;;  %v2908_v22 = vmul.f32 %v950_v18, %v2310_v11  ;;  %v1948_v19 = vpop.eup %1947  ;;  %v1320_v63 = vadd.f32 %v2803_v31, %v1301_v60  ;;  %v1839_v0 = vld [vmem:[#allocation10 + $0x18] sm:$0xff] }
 0x3e3   :  { %v1236_v23 = vmul.f32 %v1946_v3, %v1235_v5  ;;  %v1014_v61 = vpop.xlane.xlu0 %1013  ;;  %v1242_v13 = vmul.f32 %v1948_v19, %v1108_v1  ;;  %vm1248_vm8 = vweird.f32 %v1948_v19 }
 0x3e4   :  { %1949 = vrsqrt.f32 %v1109_v26  ;;  %v1046_v17 = vmul.f32 %v2908_v22, %v2908_v22  ;;  %v1030_v56 = vmul.f32 %v1014_v61, %v2310_v11  ;;  %v1336_v57 = vmax.f32 %v1320_v63, 0.0  ;;  %v1842_v11 = vld [vmem:[#allocation10 + $0x30] sm:$0xff]  ;;  %vm1249_vm10 = vmor %vm1247_vm9, %vm1248_vm8  ;;  %v1885_v61 = vld [vmem:[%s2949_s10] ss:$0 sm:$0xff] }
 0x3e5   :  { %v1243_v9 = vmul.f32 %v1948_v19, %v1242_v13  ;;  %v1240_v54 = vsel %vm1239_vm7, %v1946_v3, %v1236_v23  ;;  %1559 = vmatpush.bf16.msrb.mxu0 %v1842_v11  ;;  %vm1257_vm12 = vweird.f32 %v1109_v26  ;;  %v1094_v33 = vsub.f32 %v2760_v24, %v2908_v22  ;;  %v1836_v24 = vld [vmem:[#allocation10] sm:$0xff] }
 0x3e6   :  { %v1062_v44 = vsub.f32 %v1030_v56, %v1046_v17  ;;  %v1346_v4 = vpack.c.bf16 %v1336_v57, %v1335_v20  ;;  %v1283_v49 = vmul.f32 %v1240_v54, %v1091_v7 }
 0x3e7   :  { %v1244_v42 = vmul.f32 0.5, %v1243_v9 }
 0x3e8   :  { %v1078_v25 = vmax.f32 %v1062_v44, 0.0  ;;  %1450 = vmatmul.bf16.gmra.mxu3 %v1346_v4  ;;  %v1302_v15 = vmul.f32 %v2789_v47, %v1283_v49 }
 0x3e9   :  { %v1245_v48 = vsub.f32 1.5, %v1244_v42  ;;  %1560 = vmatpush.bf16.msrb.mxu0 %v1841_v2 }
 0x3ea   :  { %v1950_v51 = vpop.eup %1949  ;;  %v1110_v12 = vadd.f32 1e-05, %v1078_v25  ;;  %v1321_v36 = vadd.f32 %v2803_v31, %v1302_v15 }
 0x3eb   :  { %v1252_v21 = vmul.f32 %v1950_v51, %v1109_v26  ;;  %v1246_v59 = vmul.f32 %v1948_v19, %v1245_v48  ;;  %vm1258_vm11 = vweird.f32 %v1950_v51 }
 0x3ec   :  { %1951 = vrsqrt.f32 %v1110_v12  ;;  %vm1259_vm13 = vmor %vm1257_vm12, %vm1258_vm11  ;;  %v1337_v35 = vmax.f32 %v1321_v36, 0.0  ;;  %vm1267_vm15 = vweird.f32 %v1110_v12 }
 0x3ed   :  { %v1253_v40 = vmul.f32 %v1950_v51, %v1252_v21  ;;  %v1250_v29 = vsel %vm1249_vm10, %v1948_v19, %v1246_v59  ;;  %1561 = vmatpush.bf16.msrb.mxu0 %v1840_v28  ;;  %v1837_v19 = vld [vmem:[#allocation10 + $0x8] sm:$0xff] }
 0x3ee   :  { %v1284_v32 = vmul.f32 %v1250_v29, %v1092_v50 }
 0x3ef   :  { %v1254_v53 = vmul.f32 0.5, %v1253_v40 }
 0x3f0   :  { %v1303_v10 = vmul.f32 %v2789_v47, %v1284_v32 }
 0x3f1   :  { %v1255_v34 = vsub.f32 1.5, %v1254_v53  ;;  %1562 = vmatpush.bf16.msrb.mxu0 %v1839_v0 }
 0x3f2   :  { %v1952_v16 = vpop.eup %1951  ;;  %v1322_v6 = vadd.f32 %v2803_v31, %v1303_v10 }
 0x3f3   :  { %v1256_v3 = vmul.f32 %v1950_v51, %v1255_v34  ;;  %v1262_v45 = vmul.f32 %v1952_v16, %v1110_v12  ;;  %vm1268_vm14 = vweird.f32 %v1952_v16 }
 0x3f4   :  { %v1338_v1 = vmax.f32 %v1322_v6, 0.0  ;;  %vm1269_vm0 = vmor %vm1267_vm15, %vm1268_vm14 }
 0x3f5   :  { %v1263_v39 = vmul.f32 %v1952_v16, %v1262_v45  ;;  %v1260_v52 = vsel %vm1259_vm13, %v1950_v51, %v1256_v3  ;;  %1563 = vmatpush.bf16.msrb.mxu0 %v1838_v37 }
 0x3f6   :  { %v1347_v38 = vpack.c.bf16 %v1338_v1, %v1337_v35  ;;  %v1285_v41 = vmul.f32 %v1260_v52, %v1093_v30 }
 0x3f7   :  { %v1264_v46 = vmul.f32 0.5, %v1263_v39 }
 0x3f8   :  { %1455 = vmatmul.bf16.gmra.mxu3 %v1347_v38  ;;  %v1304_v58 = vmul.f32 %v2789_v47, %v1285_v41 }
 0x3f9   :  { %v1265_v55 = vsub.f32 1.5, %v1264_v46  ;;  %1564 = vmatpush.bf16.msrb.mxu0 %v1837_v19 }
 0x3fa   :  { %v1323_v18 = vadd.f32 %v2803_v31, %v1304_v58 }
 0x3fb   :  { %v1266_v62 = vmul.f32 %v1952_v16, %v1265_v55 }
 0x3fc   :  { %v1339_v14 = vmax.f32 %v1323_v18, 0.0  ;;  %v1886_v18 = vld [vmem:[%s2951_s12] ss:$0 sm:$0xff]  ;;  %s2121_s12 = smov [#allocation11]  }
 0x3fd   :  { %v1270_v8 = vsel %vm1269_vm0, %v1952_v16, %v1266_v62  ;;  %1565 = vmatpush.bf16.msrb.mxu0 %v1836_v24  ;;  %s1627_s22 = sshll.u32 %s2121_s12, 4  ;;  %s1628_s22 = int_to_ptr.vmem [resolvable:$true] %s1627_s22 }
 0x3fe   :  { %v1286_v5 = vmul.f32 %v1270_v8, %v1094_v33 }
 0x400   :  { %v1305_v43 = vmul.f32 %v2789_v47, %v1286_v5 }
 0x402   :  { %v1324_v60 = vadd.f32 %v2803_v31, %v1305_v43 }
 0x404   :  { %v1340_v26 = vmax.f32 %v1324_v60, 0.0 }
 0x406   :  { %v1348_v23 = vpack.c.bf16 %v1340_v26, %v1339_v14 }
 0x408   :  { %1460 = vmatmul.bf16.gmra.mxu3 %v1348_v23 }
 0x41b   :  { %v1426_v22 = vpop.f32.mrf.mxu3 }
 0x41c   :  { %v1427_v63 = vadd.f32 %v1885_v61, %v1426_v22 }
 0x41e   :  { %v1466_v17 = vmax.f32 %v1427_v63, 0.0 }
 0x423   :  { %v1428_v47 = vpop.f32.mrf.mxu3 }
 0x424   :  { %v1429_v13 = vadd.f32 %v1885_v61, %v1428_v47 }
 0x426   :  { %v1467_v56 = vmax.f32 %v1429_v13, 0.0 }
 0x428   :  { %v1482_v31 = vpack.c.bf16 %v1467_v56, %v1466_v17 }
 0x42a   :  { %1566 = vmatmul.bf16.vlgmr.msrb.gmra.mxu0 %v1482_v31 }
 0x42b   :  { %v1431_v20 = vpop.f32.mrf.mxu3 }
 0x42c   :  { %v1432_v57 = vadd.f32 %v1885_v61, %v1431_v20 }
 0x42e   :  { %v1468_v7 = vmax.f32 %v1432_v57, 0.0 }
 0x433   :  { %v1433_v9 = vpop.f32.mrf.mxu3 }
 0x434   :  { %v1434_v54 = vadd.f32 %v1885_v61, %v1433_v9 }
 0x436   :  { %v1469_v44 = vmax.f32 %v1434_v54, 0.0 }
 0x438   :  { %v1483_v4 = vpack.c.bf16 %v1469_v44, %v1468_v7 }
 0x43a   :  { %1571 = vmatmul.bf16.gmra.mxu0 %v1483_v4 }
 0x43b   :  { %v1436_v42 = vpop.f32.mrf.mxu3 }
 0x43c   :  { %v1437_v25 = vadd.f32 %v1885_v61, %v1436_v42 }
 0x43e   :  { %v1470_v51 = vmax.f32 %v1437_v25, 0.0 }
 0x443   :  { %v1438_v49 = vpop.f32.mrf.mxu3 }
 0x444   :  { %v1439_v27 = vadd.f32 %v1885_v61, %v1438_v49 }
 0x446   :  { %v1471_v48 = vmax.f32 %v1439_v27, 0.0 }
 0x448   :  { %v1484_v21 = vpack.c.bf16 %v1471_v48, %v1470_v51 }
 0x44a   :  { %1576 = vmatmul.bf16.gmra.mxu0 %v1484_v21 }
 0x44b   :  { %v1441_v12 = vpop.f32.mrf.mxu3 }
 0x44c   :  { %v1442_v11 = vadd.f32 %v1885_v61, %v1441_v12 }
 0x44e   :  { %v1472_v40 = vmax.f32 %v1442_v11, 0.0 }
 0x453   :  { %v1443_v59 = vpop.f32.mrf.mxu3 }
 0x454   :  { %v1444_v50 = vadd.f32 %v1885_v61, %v1443_v59 }
 0x456   :  { %v1473_v15 = vmax.f32 %v1444_v50, 0.0 }
 0x458   :  { %v1485_v29 = vpack.c.bf16 %v1473_v15, %v1472_v40 }
 0x45a   :  { %1581 = vmatmul.bf16.gmra.mxu0 %v1485_v29 }
 0x45b   :  { %v1446_v53 = vpop.f32.mrf.mxu3 }
 0x45c   :  { %v1447_v32 = vadd.f32 %v1885_v61, %v1446_v53 }
 0x45e   :  { %v1474_v10 = vmax.f32 %v1447_v32, 0.0 }
 0x463   :  { %v1448_v2 = vpop.f32.mrf.mxu3 }
 0x464   :  { %v1449_v34 = vadd.f32 %v1885_v61, %v1448_v2 }
 0x466   :  { %v1475_v36 = vmax.f32 %v1449_v34, 0.0 }
 0x468   :  { %v1486_v16 = vpack.c.bf16 %v1475_v36, %v1474_v10 }
 0x46a   :  { %1586 = vmatmul.bf16.gmra.mxu0 %v1486_v16 }
 0x46b   :  { %v1451_v3 = vpop.f32.mrf.mxu3 }
 0x46c   :  { %v1452_v6 = vadd.f32 %v1885_v61, %v1451_v3 }
 0x46e   :  { %v1476_v35 = vmax.f32 %v1452_v6, 0.0 }
 0x473   :  { %v1453_v28 = vpop.f32.mrf.mxu3 }
 0x474   :  { %v1454_v45 = vadd.f32 %v1885_v61, %v1453_v28 }
 0x476   :  { %v1477_v1 = vmax.f32 %v1454_v45, 0.0 }
 0x478   :  { %v1487_v39 = vpack.c.bf16 %v1477_v1, %v1476_v35 }
 0x47a   :  { %1591 = vmatmul.bf16.gmra.mxu0 %v1487_v39 }
 0x47b   :  { %v1456_v52 = vpop.f32.mrf.mxu3 }
 0x47c   :  { %v1457_v30 = vadd.f32 %v1885_v61, %v1456_v52 }
 0x47e   :  { %v1478_v41 = vmax.f32 %v1457_v30, 0.0 }
 0x483   :  { %v1458_v38 = vpop.f32.mrf.mxu3 }
 0x484   :  { %v1459_v46 = vadd.f32 %v1885_v61, %v1458_v38 }
 0x486   :  { %v1479_v55 = vmax.f32 %v1459_v46, 0.0 }
 0x488   :  { %v1488_v62 = vpack.c.bf16 %v1479_v55, %v1478_v41 }
 0x48a   :  { %1596 = vmatmul.bf16.gmra.mxu0 %v1488_v62 }
 0x48b   :  { %v1461_v33 = vpop.f32.mrf.mxu3 }
 0x48c   :  { %v1462_v58 = vadd.f32 %v1885_v61, %v1461_v33 }
 0x48e   :  { %v1480_v5 = vmax.f32 %v1462_v58, 0.0 }
 0x493   :  { %v1463_v8 = vpop.f32.mrf.mxu3 }
 0x494   :  { %v1464_v0 = vadd.f32 %v1885_v61, %v1463_v8 }
 0x496   :  { %v1481_v37 = vmax.f32 %v1464_v0, 0.0 }
 0x498   :  { %v1489_v43 = vpack.c.bf16 %v1481_v37, %v1480_v5 }
 0x49a   :  { %1601 = vmatmul.bf16.gmra.mxu0 %v1489_v43 }
 0x4a7   :  { %v1567_v60 = vpop.f32.mrf.mxu0 }
 0x4a8   :  { %v1568_v14 = vadd.f32 %v1886_v18, %v1567_v60 }
 0x4aa   :  { %1607 = vst [vmem:[#allocation11] sm:$0xff] %v1568_v14 }
 0x4af   :  { %v1569_v26 = vpop.f32.mrf.mxu0 }
 0x4b0   :  { %v1570_v19 = vadd.f32 %v1886_v18, %v1569_v26 }
 0x4b2   :  { %1608 = vst [vmem:[#allocation11 + $0x8] sm:$0xff] %v1570_v19 }
 0x4b7   :  { %v1572_v23 = vpop.f32.mrf.mxu0 }
 0x4b8   :  { %v1573_v24 = vadd.f32 %v1886_v18, %v1572_v23 }
 0x4ba   :  { %1609 = vst [vmem:[#allocation11 + $0x10] sm:$0xff] %v1573_v24 }
 0x4bf   :  { %v1574_v22 = vpop.f32.mrf.mxu0 }
 0x4c0   :  { %v1575_v63 = vadd.f32 %v1886_v18, %v1574_v22 }
 0x4c2   :  { %1610 = vst [vmem:[#allocation11 + $0x18] sm:$0xff] %v1575_v63 }
 0x4c7   :  { %v1577_v61 = vpop.f32.mrf.mxu0 }
 0x4c8   :  { %v1578_v47 = vadd.f32 %v1886_v18, %v1577_v61 }
 0x4ca   :  { %1611 = vst [vmem:[#allocation11 + $0x20] sm:$0xff] %v1578_v47 }
 0x4cf   :  { %v1579_v13 = vpop.f32.mrf.mxu0 }
 0x4d0   :  { %v1580_v17 = vadd.f32 %v1886_v18, %v1579_v13 }
 0x4d2   :  { %1612 = vst [vmem:[#allocation11 + $0x28] sm:$0xff] %v1580_v17 }
 0x4d7   :  { %v1582_v56 = vpop.f32.mrf.mxu0 }
 0x4d8   :  { %v1583_v31 = vadd.f32 %v1886_v18, %v1582_v56 }
 0x4da   :  { %1613 = vst [vmem:[#allocation11 + $0x30] sm:$0xff] %v1583_v31 }
 0x4df   :  { %v1584_v20 = vpop.f32.mrf.mxu0 }
 0x4e0   :  { %v1585_v57 = vadd.f32 %v1886_v18, %v1584_v20 }
 0x4e2   :  { %1614 = vst [vmem:[#allocation11 + $0x38] sm:$0xff] %v1585_v57 }
 0x4e7   :  { %v1587_v9 = vpop.f32.mrf.mxu0 }
 0x4e8   :  { %v1588_v54 = vadd.f32 %v1886_v18, %v1587_v9 }
 0x4ea   :  { %1615 = vst [vmem:[#allocation11 + $0x40] sm:$0xff] %v1588_v54 }
 0x4ef   :  { %v1589_v7 = vpop.f32.mrf.mxu0 }
 0x4f0   :  { %v1590_v44 = vadd.f32 %v1886_v18, %v1589_v7 }
 0x4f2   :  { %1616 = vst [vmem:[#allocation11 + $0x48] sm:$0xff] %v1590_v44 }
 0x4f7   :  { %v1592_v4 = vpop.f32.mrf.mxu0 }
 0x4f8   :  { %v1593_v42 = vadd.f32 %v1886_v18, %v1592_v4 }
 0x4fa   :  { %1617 = vst [vmem:[#allocation11 + $0x50] sm:$0xff] %v1593_v42 }
 0x4ff   :  { %v1594_v25 = vpop.f32.mrf.mxu0 }
 0x500   :  { %v1595_v49 = vadd.f32 %v1886_v18, %v1594_v25 }
 0x502   :  { %1618 = vst [vmem:[#allocation11 + $0x58] sm:$0xff] %v1595_v49 }
 0x507   :  { %v1597_v27 = vpop.f32.mrf.mxu0 }
 0x508   :  { %v1598_v51 = vadd.f32 %v1886_v18, %v1597_v27 }
 0x50a   :  { %1619 = vst [vmem:[#allocation11 + $0x60] sm:$0xff] %v1598_v51 }
 0x50f   :  { %v1599_v48 = vpop.f32.mrf.mxu0 }
 0x510   :  { %v1600_v21 = vadd.f32 %v1886_v18, %v1599_v48 }
 0x512   :  { %1620 = vst [vmem:[#allocation11 + $0x68] sm:$0xff] %v1600_v21 }
 0x517   :  { %v1602_v12 = vpop.f32.mrf.mxu0 }
 0x518   :  { %v1603_v11 = vadd.f32 %v1886_v18, %v1602_v12 }
 0x51a   :  { %1621 = vst [vmem:[#allocation11 + $0x70] sm:$0xff] %v1603_v11 }
 0x51f   :  { %v1604_v59 = vpop.f32.mrf.mxu0 }
 0x520   :  { %v1605_v50 = vadd.f32 %v1886_v18, %v1604_v59 }
 0x522   :  { %1622 = vst [vmem:[#allocation11 + $0x78] sm:$0xff] %v1605_v50 }
 0x523   :  { %1635 = dma.vmem_to_hbm [thread:$0]  %s1628_s22, 2048, %s1630_s24, [#allocation4], %s2122_s25, %s2122_s25, %s2123_s26  }
 0x524   :  { %2111 = dma.done.wait [#allocation4], 2048  }
 0x525   :  { %2112 = vsyncadd [#allocation4], 4294965248 }
 0x526   :  { %1640 = vsyncpa [#allocation3], 1 }
 0x527   :  { %1641 = vsyncpa [#allocation6], 1 }
 0x528   :  { %1642 = vsyncpa [#allocation9], 1 }
 0x529   :  { %1643 = vsyncpa [#allocation4], 1 }

</bundles_post_ra>
